<compile_context>
chip_gen: v5e
topology: v5e:2x2
jax: 0.10.0
libtpu: 0.0.40
codegen_flags: <defaults>
</compile_context>

<pallas_src>
import functools
import math

import jax
import jax.numpy as jnp
from jax import lax
from jax.experimental import pallas as pl
from jax.experimental.pallas import tpu as pltpu


def _round_up(x, m):
    return ((x + m - 1) // m) * m


# --------------------------------------------------------------------------
# Stage 1: attention + conv2[0] + partial BatchNorm statistics (per batch)
# --------------------------------------------------------------------------
def _stage1_kernel(k_real, x_ref, w1t_ref, b1_ref, w0_ref, w2t_ref,
                   t_ref, stats_ref):
    f32 = jnp.float32
    bf16 = jnp.bfloat16

    x = x_ref[0]                                         # (n, c_pad)
    xb = x.astype(bf16)

    # conv1: 1x1 Conv2d with bias   y = x @ W1^T + b1            (n, c_pad)
    y = jnp.dot(xb, w1t_ref[...], preferred_element_type=f32) + b1_ref[...]

    # linear_0: Conv1d c->k, no bias   logits = y @ W0^T         (n, k_pad)
    logits = lax.dot_general(y.astype(bf16), w0_ref[...],
                             (((1,), (1,)), ((), ())),
                             preferred_element_type=f32)

    # softmax over the spatial dim (torch dim=-1 of (b, k, n) == axis 0 here)
    m = jnp.max(logits, axis=0, keepdims=True)
    e = jnp.exp(logits - m)
    attn = e * pl.reciprocal(jnp.sum(e, axis=0, keepdims=True), approx=True)

    # zero the padded memory units (they would otherwise be uniform 1/n and
    # corrupt the L1 normalization below)
    k_pad = attn.shape[-1]
    kmask = lax.broadcasted_iota(jnp.int32, (1, k_pad), 1) < k_real
    attn = jnp.where(kmask, attn, 0.0)

    # L1 normalization over the k memory units (torch dim=1 == axis 1 here)
    l1 = 1e-09 + jnp.sum(attn, axis=1, keepdims=True)
    attn = attn * pl.reciprocal(l1, approx=True)

    # linear_1 (weight tied to linear_0^T):  z = attn @ W0       (n, c_pad)
    z = jnp.dot(attn.astype(bf16), w0_ref[...], preferred_element_type=f32)

    # conv2[0]: 1x1 Conv2d, no bias:  t = z @ W2^T               (n, c_pad)
    t = jnp.dot(z.astype(bf16), w2t_ref[...], preferred_element_type=f32)
    t_ref[0] = t

    # partial BatchNorm statistics for this batch element (single pass:
    # sum and sum-of-squares, f32 accumulation)
    s1 = jnp.sum(t, axis=0, keepdims=True)               # (1, c_pad)
    s2 = jnp.sum(t * t, axis=0, keepdims=True)           # (1, c_pad)
    pad = jnp.zeros((6,) + s1.shape[1:], f32)
    stats_ref[0] = jnp.concatenate([s1, s2, pad], axis=0)


# --------------------------------------------------------------------------
# Stage 2: fused BatchNorm apply + residual add + ReLU (tiled, lane-dense)
# --------------------------------------------------------------------------
def _stage2_kernel(t_ref, x_ref, scale_ref, shift_ref, o_ref):
    t = t_ref[...]                                       # (tile, c_pad) f32
    res = x_ref[...].astype(jnp.float32)
    y = t * scale_ref[...] + shift_ref[...] + res
    o_ref[...] = jnp.maximum(y, 0.0).astype(o_ref.dtype)


# --------------------------------------------------------------------------
# Wrapper
# --------------------------------------------------------------------------
def external_attention(x_nchw, params):
    b, c, h, w = x_nchw.shape
    n = h * w
    k = params["w0"].shape[0]
    in_dtype = x_nchw.dtype
    x_bytes = jnp.dtype(in_dtype).itemsize

    c_pad = _round_up(c, 128)
    k_pad = _round_up(k, 128)

    # NCHW -> channels-last (b, n, c), zero-pad channels to a lane multiple.
    # TODO(synk): if the surrounding model is NHWC these transposes disappear;
    # with NCHW inputs they cost one extra XLA layout pass.
    x2 = jnp.transpose(x_nchw, (0, 2, 3, 1)).reshape(b, n, c)
    x2 = jnp.pad(x2, ((0, 0), (0, 0), (0, c_pad - c)))

    # Weights: zero-padded, bf16 for MXU operands (f32 accumulation in-kernel).
    # Only w0 is shipped (linear_1's tied weight is expressed via dot_general).
    w1t = jnp.pad(params["w1"].T, ((0, c_pad - c), (0, c_pad - c))).astype(jnp.bfloat16)
    w2t = jnp.pad(params["w2"].T, ((0, c_pad - c), (0, c_pad - c))).astype(jnp.bfloat16)
    w0 = jnp.pad(params["w0"], ((0, k_pad - k), (0, c_pad - c))).astype(jnp.bfloat16)
    b1 = jnp.pad(params["b1"], (0, c_pad - c)).reshape(1, c_pad).astype(jnp.float32)
    gamma = jnp.pad(params["gamma"], (0, c_pad - c)).astype(jnp.float32)
    beta = jnp.pad(params["beta"], (0, c_pad - c)).astype(jnp.float32)

    # -------- stage 1: per-batch attention + conv2[0] + partial BN stats ----
    est1 = (2 * (n * c_pad * x_bytes + n * c_pad * 4 + 8 * c_pad * 4)   # dbl-buffered blocks
            + 2 * c_pad * c_pad * 2 + k_pad * c_pad * 2 + c_pad * 4     # resident weights
            + 3 * n * c_pad * 4 + 2 * n * k_pad * 4)                    # intermediates
    vmem1 = int(min(max(2 * est1, 32 * 1024 * 1024), 64 * 1024 * 1024))

    t, stats = pl.pallas_call(
        functools.partial(_stage1_kernel, k),
        grid=(b,),
        in_specs=[
            pl.BlockSpec((1, n, c_pad), lambda i: (i, 0, 0)),    # x, streamed per batch
            pl.BlockSpec((c_pad, c_pad), lambda i: (0, 0)),      # w1t (resident)
            pl.BlockSpec((1, c_pad), lambda i: (0, 0)),          # b1
            pl.BlockSpec((k_pad, c_pad), lambda i: (0, 0)),      # w0
            pl.BlockSpec((c_pad, c_pad), lambda i: (0, 0)),      # w2t
        ],
        out_specs=[
            pl.BlockSpec((1, n, c_pad), lambda i: (i, 0, 0)),    # t
            pl.BlockSpec((1, 8, c_pad), lambda i: (i, 0, 0)),    # partial BN stats
        ],
        out_shape=[
            jax.ShapeDtypeStruct((b, n, c_pad), jnp.float32),
            jax.ShapeDtypeStruct((b, 8, c_pad), jnp.float32),
        ],
        compiler_params=pltpu.CompilerParams(
            dimension_semantics=("parallel",),
            vmem_limit_bytes=vmem1),
    )(x2, w1t, b1, w0, w2t)

    # -------- BN finalize (tiny (B, C_pad) reduction in plain JAX) ----------
    # Training-mode BatchNorm2d: biased variance over (B, H, W), eps = 1e-5.
    # TODO(synk): running-mean/var buffer updates (training side effect) are
    # not modeled; only the normalized forward output is produced.
    count = float(b * n)
    mean = jnp.sum(stats[:, 0, :], axis=0) / count
    var = jnp.maximum(jnp.sum(stats[:, 1, :], axis=0) / count - mean * mean, 0.0)
    rstd = lax.rsqrt(var + 1e-5)
    scale = (gamma * rstd).reshape(1, c_pad)
    shift = (beta - mean * gamma * rstd).reshape(1, c_pad)

    # -------- stage 2: fused BN apply + residual + ReLU ---------------------
    rows = b * n
    tile = rows
    for cand in (4096, 2048, 1024, 512, 256, 128, 64, 32, 16, 8):
        if rows % cand == 0 and rows // cand >= 2:
            tile = cand
            break

    t_flat = t.reshape(rows, c_pad)
    x_flat = x2.reshape(rows, c_pad)

    est2 = 2 * tile * c_pad * (4 + 2 * x_bytes) + 2 * c_pad * 4
    vmem2 = int(min(max(2 * est2, 32 * 1024 * 1024), 64 * 1024 * 1024))

    out_flat = pl.pallas_call(
        _stage2_kernel,
        grid=(rows // tile,),
        in_specs=[
            pl.BlockSpec((tile, c_pad), lambda i: (i, 0)),       # t tile
            pl.BlockSpec((tile, c_pad), lambda i: (i, 0)),       # residual tile
            pl.BlockSpec((1, c_pad), lambda i: (0, 0)),          # scale
            pl.BlockSpec((1, c_pad), lambda i: (0, 0)),          # shift
        ],
        out_specs=pl.BlockSpec((tile, c_pad), lambda i: (i, 0)),
        out_shape=jax.ShapeDtypeStruct((rows, c_pad), in_dtype),
        compiler_params=pltpu.CompilerParams(
            dimension_semantics=("parallel",),
            vmem_limit_bytes=vmem2),
    )(t_flat, x_flat, scale, shift)

    # back to NCHW, dropping channel padding
    out = out_flat.reshape(b, h, w, c_pad)[..., :c]
    return jnp.transpose(out, (0, 3, 1, 2))


def init_params(key, c, k=64):
    # Mirrors the module's __init__: normal(0, sqrt(2/n)) for conv weights,
    # BN gamma=1 / beta=0, linear_1 weight tied to linear_0^T (handled in fwd).
    k1, k2, k3, k4 = jax.random.split(key, 4)
    w1 = jax.random.normal(k1, (c, c), jnp.float32) * math.sqrt(2.0 / c)      # conv1 (c,c,1,1)
    bnd = 1.0 / math.sqrt(c)
    b1 = jax.random.uniform(k2, (c,), jnp.float32, -bnd, bnd)                 # conv1 bias
    w0 = jax.random.normal(k3, (k, c), jnp.float32) * math.sqrt(2.0 / k)      # linear_0 (k,c,1)
    w2 = jax.random.normal(k4, (c, c), jnp.float32) * math.sqrt(2.0 / c)      # conv2[0] (c,c,1,1)
    gamma = jnp.ones((c,), jnp.float32)
    beta = jnp.zeros((c,), jnp.float32)
    return dict(w1=w1, b1=b1, w0=w0, w2=w2, gamma=gamma, beta=beta)


if __name__ == "__main__":
    key = jax.random.PRNGKey(0)
    kx, kp = jax.random.split(key)

    B, C, H, W = 2, 4, 16, 16
    x = jax.random.normal(kx, (B, C, H, W), jnp.float32)
    params = init_params(kp, C)

    fwd = jax.jit(external_attention)
    out = fwd(x, params)
    jax.block_until_ready(out)

    assert out.shape == (B, C, H, W)
    assert bool(jnp.all(out >= 0.0))          # ReLU output
    assert bool(jnp.all(jnp.isfinite(out)))
    print("KERNEL_OK")
</pallas_src>

<mosaic_0001>
module attributes {stable_mosaic.version = 11 : i64} {
  func.func @_stage2_kernel(%arg0: i32, %arg1: memref<256x128xf32, #tpu.memory_space<vmem>>, %arg2: memref<256x128xf32, #tpu.memory_space<vmem>>, %arg3: memref<1x128xf32, #tpu.memory_space<vmem>>, %arg4: memref<1x128xf32, #tpu.memory_space<vmem>>, %arg5: memref<256x128xf32, #tpu.memory_space<vmem>>) attributes {dimension_semantics = [#tpu.dimension_semantics<parallel>], iteration_bounds = array<i64: 2>, scalar_prefetch = 0 : i64, scratch_operands = 0 : i64, tpu.core_type = #tpu.core_type<tc>, window_params = [{transform_indices = @transform_0, window_bounds = array<i64: 256, 128>}, {transform_indices = @transform_1, window_bounds = array<i64: 256, 128>}, {pipeline_mode = #tpu.pipeline_mode<synchronous>, transform_indices = @transform_2, window_bounds = array<i64: 1, 128>}, {pipeline_mode = #tpu.pipeline_mode<synchronous>, transform_indices = @transform_3, window_bounds = array<i64: 1, 128>}, {transform_indices = @transform_4, window_bounds = array<i64: 256, 128>}]} {
    %c0 = arith.constant 0 : index
    %c0_0 = arith.constant 0 : index
    %0 = vector.load %arg1[%c0, %c0_0] : memref<256x128xf32, #tpu.memory_space<vmem>>, vector<256x128xf32>
    %c0_1 = arith.constant 0 : index
    %c0_2 = arith.constant 0 : index
    %1 = vector.load %arg2[%c0_1, %c0_2] : memref<256x128xf32, #tpu.memory_space<vmem>>, vector<256x128xf32>
    %c0_3 = arith.constant 0 : index
    %c0_4 = arith.constant 0 : index
    %2 = vector.load %arg3[%c0_3, %c0_4] : memref<1x128xf32, #tpu.memory_space<vmem>>, vector<1x128xf32>
    %3 = vector.broadcast %2 : vector<1x128xf32> to vector<256x128xf32>
    %4 = arith.mulf %0, %3 : vector<256x128xf32>
    %c0_5 = arith.constant 0 : index
    %c0_6 = arith.constant 0 : index
    %5 = vector.load %arg4[%c0_5, %c0_6] : memref<1x128xf32, #tpu.memory_space<vmem>>, vector<1x128xf32>
    %6 = vector.broadcast %5 : vector<1x128xf32> to vector<256x128xf32>
    %7 = arith.addf %4, %6 : vector<256x128xf32>
    %8 = arith.addf %7, %1 : vector<256x128xf32>
    %cst = arith.constant 0.000000e+00 : f32
    %9 = vector.broadcast %cst : f32 to vector<256x128xf32>
    %10 = arith.maximumf %8, %9 : vector<256x128xf32>
    %c0_7 = arith.constant 0 : index
    %c0_8 = arith.constant 0 : index
    %11 = vector.load %arg5[%c0_7, %c0_8] : memref<256x128xf32, #tpu.memory_space<vmem>>, vector<256x128xf32>
    tpu.vector_store %arg5[%c0_7, %c0_8], %10 {strides = array<i32>} : memref<256x128xf32, #tpu.memory_space<vmem>>, vector<256x128xf32>,
    return
  }
  func.func @transform_0(%arg0: i32) -> (i32, i32) {
    %c0_i32 = arith.constant 0 : i32
    %c0_i32_0 = arith.constant 0 : i32
    return %arg0, %c0_i32 : i32, i32
  }
  func.func @transform_1(%arg0: i32) -> (i32, i32) {
    %c0_i32 = arith.constant 0 : i32
    %c0_i32_0 = arith.constant 0 : i32
    return %arg0, %c0_i32 : i32, i32
  }
  func.func @transform_2(%arg0: i32) -> (i32, i32) {
    %c0_i32 = arith.constant 0 : i32
    %c0_i32_0 = arith.constant 0 : i32
    %c0_i32_1 = arith.constant 0 : i32
    return %c0_i32, %c0_i32_0 : i32, i32
  }
  func.func @transform_3(%arg0: i32) -> (i32, i32) {
    %c0_i32 = arith.constant 0 : i32
    %c0_i32_0 = arith.constant 0 : i32
    %c0_i32_1 = arith.constant 0 : i32
    return %c0_i32, %c0_i32_0 : i32, i32
  }
  func.func @transform_4(%arg0: i32) -> (i32, i32) {
    %c0_i32 = arith.constant 0 : i32
    %c0_i32_0 = arith.constant 0 : i32
    return %arg0, %c0_i32 : i32, i32
  }
}

module attributes {stable_mosaic.version = 11 : i64} {
  func.func @_stage1_kernel(%arg0: i32, %arg1: memref<1x256x128xf32, #tpu.memory_space<vmem>>, %arg2: memref<128x128xbf16, #tpu.memory_space<vmem>>, %arg3: memref<1x128xf32, #tpu.memory_space<vmem>>, %arg4: memref<128x128xbf16, #tpu.memory_space<vmem>>, %arg5: memref<128x128xbf16, #tpu.memory_space<vmem>>, %arg6: memref<1x256x128xf32, #tpu.memory_space<vmem>>, %arg7: memref<1x8x128xf32, #tpu.memory_space<vmem>>) attributes {dimension_semantics = [#tpu.dimension_semantics<parallel>], iteration_bounds = array<i64: 2>, scalar_prefetch = 0 : i64, scratch_operands = 0 : i64, tpu.core_type = #tpu.core_type<tc>, window_params = [{transform_indices = @transform_0, window_bounds = array<i64: 1, 256, 128>}, {pipeline_mode = #tpu.pipeline_mode<synchronous>, transform_indices = @transform_1, window_bounds = array<i64: 128, 128>}, {pipeline_mode = #tpu.pipeline_mode<synchronous>, transform_indices = @transform_2, window_bounds = array<i64: 1, 128>}, {pipeline_mode = #tpu.pipeline_mode<synchronous>, transform_indices = @transform_3, window_bounds = array<i64: 128, 128>}, {pipeline_mode = #tpu.pipeline_mode<synchronous>, transform_indices = @transform_4, window_bounds = array<i64: 128, 128>}, {transform_indices = @transform_5, window_bounds = array<i64: 1, 256, 128>}, {transform_indices = @transform_6, window_bounds = array<i64: 1, 8, 128>}]} {
    %c0 = arith.constant 0 : index
    %c0_0 = arith.constant 0 : index
    %c0_1 = arith.constant 0 : index
    %0 = vector.load %arg1[%c0, %c0_0, %c0_1] : memref<1x256x128xf32, #tpu.memory_space<vmem>>, vector<1x256x128xf32>
    %1 = vector.shape_cast %0 : vector<1x256x128xf32> to vector<256x128xf32>
    %2 = arith.truncf %1 : vector<256x128xf32> to vector<256x128xbf16>
    %c0_2 = arith.constant 0 : index
    %c0_3 = arith.constant 0 : index
    %3 = vector.load %arg2[%c0_2, %c0_3] : memref<128x128xbf16, #tpu.memory_space<vmem>>, vector<128x128xbf16>
    %cst = arith.constant dense<0.000000e+00> : vector<256x128xf32>
    %4 = tpu.matmul %2, %3, %cst {dimension_numbers = #tpu.dot_dimension_numbers<[1], [0], [0], [1], [0, 0, 1, 1], [], []>} : vector<256x128xbf16>, vector<128x128xbf16>, vector<256x128xf32> -> vector<256x128xf32>
    %c0_4 = arith.constant 0 : index
    %c0_5 = arith.constant 0 : index
    %5 = vector.load %arg3[%c0_4, %c0_5] : memref<1x128xf32, #tpu.memory_space<vmem>>, vector<1x128xf32>
    %6 = vector.broadcast %5 : vector<1x128xf32> to vector<256x128xf32>
    %7 = arith.addf %4, %6 : vector<256x128xf32>
    %8 = arith.truncf %7 : vector<256x128xf32> to vector<256x128xbf16>
    %c0_6 = arith.constant 0 : index
    %c0_7 = arith.constant 0 : index
    %9 = vector.load %arg4[%c0_6, %c0_7] : memref<128x128xbf16, #tpu.memory_space<vmem>>, vector<128x128xbf16>
    %cst_8 = arith.constant dense<0.000000e+00> : vector<256x128xf32>
    %10 = tpu.matmul %8, %9, %cst_8 {dimension_numbers = #tpu.dot_dimension_numbers<[1], [1], [0], [0], [0, 0, 1, 0], [], []>} : vector<256x128xbf16>, vector<128x128xbf16>, vector<256x128xf32> -> vector<256x128xf32>
    %cst_9 = arith.constant dense<0xFF800000> : vector<128xf32>
    %11 = vector.multi_reduction <maximumf>, %10, %cst_9 [0] : vector<256x128xf32> to vector<128xf32>
    %12 = vector.shape_cast %11 : vector<128xf32> to vector<1x128xf32>
    %13 = vector.broadcast %12 : vector<1x128xf32> to vector<256x128xf32>
    %14 = arith.subf %10, %13 : vector<256x128xf32>
    %15 = math.exp %14 : vector<256x128xf32>
    %cst_10 = arith.constant dense<0.000000e+00> : vector<128xf32>
    %16 = vector.multi_reduction <add>, %15, %cst_10 [0] : vector<256x128xf32> to vector<128xf32>
    %17 = vector.shape_cast %16 : vector<128xf32> to vector<1x128xf32>
    %18 = tpu.reciprocal %17 {approx = true} : vector<1x128xf32> -> vector<1x128xf32>
    %19 = vector.broadcast %18 : vector<1x128xf32> to vector<256x128xf32>
    %20 = arith.mulf %15, %19 : vector<256x128xf32>
    %21 = tpu.iota {dimensions = array<i32: 1>} : vector<1x128xi32>
    %c64_i32 = arith.constant 64 : i32
    %22 = vector.broadcast %c64_i32 : i32 to vector<1x128xi32>
    %23 = arith.cmpi slt, %21, %22 : vector<1x128xi32>
    %cst_11 = arith.constant 0.000000e+00 : f32
    %24 = vector.shape_cast %23 : vector<1x128xi1> to vector<1x128xi1>
    %25 = vector.broadcast %24 : vector<1x128xi1> to vector<256x128xi1>
    %26 = vector.broadcast %cst_11 : f32 to vector<256x128xf32>
    %27 = arith.select %25, %20, %26 : vector<256x128xi1>, vector<256x128xf32>
    %cst_12 = arith.constant dense<0.000000e+00> : vector<256xf32>
    %28 = vector.multi_reduction <add>, %27, %cst_12 [1] : vector<256x128xf32> to vector<256xf32>
    %29 = vector.shape_cast %28 : vector<256xf32> to vector<256x1xf32>
    %cst_13 = arith.constant 9.99999971E-10 : f32
    %30 = vector.broadcast %cst_13 : f32 to vector<256x1xf32>
    %31 = arith.addf %30, %29 : vector<256x1xf32>
    %32 = tpu.reciprocal %31 {approx = true} : vector<256x1xf32> -> vector<256x1xf32>
    %33 = vector.broadcast %32 : vector<256x1xf32> to vector<256x128xf32>
    %34 = arith.mulf %27, %33 : vector<256x128xf32>
    %35 = arith.truncf %34 : vector<256x128xf32> to vector<256x128xbf16>
    %c0_14 = arith.constant 0 : index
    %c0_15 = arith.constant 0 : index
    %36 = vector.load %arg4[%c0_14, %c0_15] : memref<128x128xbf16, #tpu.memory_space<vmem>>, vector<128x128xbf16>
    %cst_16 = arith.constant dense<0.000000e+00> : vector<256x128xf32>
    %37 = tpu.matmul %35, %36, %cst_16 {dimension_numbers = #tpu.dot_dimension_numbers<[1], [0], [0], [1], [0, 0, 1, 1], [], []>} : vector<256x128xbf16>, vector<128x128xbf16>, vector<256x128xf32> -> vector<256x128xf32>
    %38 = arith.truncf %37 : vector<256x128xf32> to vector<256x128xbf16>
    %c0_17 = arith.constant 0 : index
    %c0_18 = arith.constant 0 : index
    %39 = vector.load %arg5[%c0_17, %c0_18] : memref<128x128xbf16, #tpu.memory_space<vmem>>, vector<128x128xbf16>
    %cst_19 = arith.constant dense<0.000000e+00> : vector<256x128xf32>
    %40 = tpu.matmul %38, %39, %cst_19 {dimension_numbers = #tpu.dot_dimension_numbers<[1], [0], [0], [1], [0, 0, 1, 1], [], []>} : vector<256x128xbf16>, vector<128x128xbf16>, vector<256x128xf32> -> vector<256x128xf32>
    %c0_20 = arith.constant 0 : index
    %c0_21 = arith.constant 0 : index
    %c0_22 = arith.constant 0 : index
    %41 = vector.load %arg6[%c0_20, %c0_21, %c0_22] : memref<1x256x128xf32, #tpu.memory_space<vmem>>, vector<1x256x128xf32>
    %42 = vector.shape_cast %41 : vector<1x256x128xf32> to vector<256x128xf32>
    %43 = vector.shape_cast %40 : vector<256x128xf32> to vector<1x256x128xf32>
    tpu.vector_store %arg6[%c0_20, %c0_21, %c0_22], %43 {strides = array<i32>} : memref<1x256x128xf32, #tpu.memory_space<vmem>>, vector<1x256x128xf32>,
    %cst_23 = arith.constant dense<0.000000e+00> : vector<128xf32>
    %44 = vector.multi_reduction <add>, %40, %cst_23 [0] : vector<256x128xf32> to vector<128xf32>
    %45 = vector.shape_cast %44 : vector<128xf32> to vector<1x128xf32>
    %46 = arith.mulf %40, %40 : vector<256x128xf32>
    %cst_24 = arith.constant dense<0.000000e+00> : vector<128xf32>
    %47 = vector.multi_reduction <add>, %46, %cst_24 [0] : vector<256x128xf32> to vector<128xf32>
    %48 = vector.shape_cast %47 : vector<128xf32> to vector<1x128xf32>
    %cst_25 = arith.constant 0.000000e+00 : f32
    %49 = vector.broadcast %cst_25 : f32 to vector<6x128xf32>
    %50 = tpu.concatenate %45, %48, %49 in 0 : vector<1x128xf32>, vector<1x128xf32>, vector<6x128xf32> -> vector<8x128xf32>
    %c0_26 = arith.constant 0 : index
    %c0_27 = arith.constant 0 : index
    %c0_28 = arith.constant 0 : index
    %51 = vector.load %arg7[%c0_26, %c0_27, %c0_28] : memref<1x8x128xf32, #tpu.memory_space<vmem>>, vector<1x8x128xf32>
    %52 = vector.shape_cast %51 : vector<1x8x128xf32> to vector<8x128xf32>
    %53 = vector.shape_cast %50 : vector<8x128xf32> to vector<1x8x128xf32>
    tpu.vector_store %arg7[%c0_26, %c0_27, %c0_28], %53 {strides = array<i32>} : memref<1x8x128xf32, #tpu.memory_space<vmem>>, vector<1x8x128xf32>,
    return
  }
  func.func @transform_0(%arg0: i32) -> (i32, i32, i32) {
    %c0_i32 = arith.constant 0 : i32
    %c0_i32_0 = arith.constant 0 : i32
    %c0_i32_1 = arith.constant 0 : i32
    return %arg0, %c0_i32, %c0_i32_0 : i32, i32, i32
  }
  func.func @transform_1(%arg0: i32) -> (i32, i32) {
    %c0_i32 = arith.constant 0 : i32
    %c0_i32_0 = arith.constant 0 : i32
    %c0_i32_1 = arith.constant 0 : i32
    return %c0_i32, %c0_i32_0 : i32, i32
  }
  func.func @transform_2(%arg0: i32) -> (i32, i32) {
    %c0_i32 = arith.constant 0 : i32
    %c0_i32_0 = arith.constant 0 : i32
    %c0_i32_1 = arith.constant 0 : i32
    return %c0_i32, %c0_i32_0 : i32, i32
  }
  func.func @transform_3(%arg0: i32) -> (i32, i32) {
    %c0_i32 = arith.constant 0 : i32
    %c0_i32_0 = arith.constant 0 : i32
    %c0_i32_1 = arith.constant 0 : i32
    return %c0_i32, %c0_i32_0 : i32, i32
  }
  func.func @transform_4(%arg0: i32) -> (i32, i32) {
    %c0_i32 = arith.constant 0 : i32
    %c0_i32_0 = arith.constant 0 : i32
    %c0_i32_1 = arith.constant 0 : i32
    return %c0_i32, %c0_i32_0 : i32, i32
  }
  func.func @transform_5(%arg0: i32) -> (i32, i32, i32) {
    %c0_i32 = arith.constant 0 : i32
    %c0_i32_0 = arith.constant 0 : i32
    %c0_i32_1 = arith.constant 0 : i32
    return %arg0, %c0_i32, %c0_i32_0 : i32, i32, i32
  }
  func.func @transform_6(%arg0: i32) -> (i32, i32, i32) {
    %c0_i32 = arith.constant 0 : i32
    %c0_i32_0 = arith.constant 0 : i32
    %c0_i32_1 = arith.constant 0 : i32
    return %arg0, %c0_i32, %c0_i32_0 : i32, i32, i32
  }
}

</mosaic_0001>

<bundles_post_ra>
// kernel: external_attention.3
= control target key start
LH: loop header
LB: loop body
LE: loop exit
PB: predicated region body
PF: predicated region fallthrough
CT: control target
= control target key end

     0   :  { %s579_s15 = smov 0   ;;  %s780_s0 = inlined_call_operand.vmem [shape: f32[512,128], index: 0, kind: input, shape index: {}]   ;;  %s781_s1 = inlined_call_operand.vmem [shape: f32[512,128], index: 1, kind: input, shape index: {}]   ;;  %s782_s2 = inlined_call_operand.vmem [shape: f32[1,128], index: 2, kind: input, shape index: {}]   ;;  %s783_s3 = inlined_call_operand.vmem [shape: f32[1,128], index: 3, kind: input, shape index: {}]   ;;  %s784_s4 = inlined_call_operand.vmem [shape: f32[512,128], index: 4, kind: output, shape index: {}]  }
   0x1 LB: > { %s523_s16 = sadd.s32 4294967295, %s552_s15   ;;  %p527_p0 = scmp.ge.s32.totalorder %s552_s15, 1  ;;  %s552_s15 = sphi %s579_s15, %s14_s15  }
   0x2   : > { %p174_p1 = scmp.lt.s32.totalorder %s552_s15, 3 }
   0x4   : > { %p175_p2 = pnand %p527_p0, %p174_p1 }
   0x5   : > { %s528_s17 = sshll.u32 (!%p175_p2), %s523_s16, 5 }
   0x6   : > { %178 = sbr.rel (%p175_p2) target bundleno = 55 (0x37), region = 36  ;;  %p206_p3 = scmp.lt.s32.totalorder (!%p175_p2), %s528_s17, 63 }
   0xb   : > { %s786_s17 = smov (!%p206_p3, %s528_s17), 63  ;;  %v590_v0 = vld [vmem:[%s782_s2] ss:$0 sm:$0xff] }
   0xc   : > { %s592_s20 = sshll.u32 %s786_s17, 3  ;;  %v609_v1 = vld [vmem:[%s783_s3] ss:$0 sm:$0xff] }
   0xd   : > { %s598_s23 = scalar_lea.vmem %s780_s0, %s592_s20  ;;  %s604_s26 = scalar_lea.vmem %s781_s1, %s592_s20 }
   0xe   : > { %v223_v2 = vld [vmem:[%s598_s23] sm:$0xff]  ;;  %v224_v3 = vld [vmem:[%s598_s23 + $0x8] sm:$0xff]  ;;  %v225_v7 = vld [vmem:[%s598_s23 + $0x10] sm:$0xff]  ;;  %s640_s5 = scalar_lea.vmem %s784_s4, %s592_s20 }
   0xf   : > { %v255_v4 = vld [vmem:[%s604_s26] sm:$0xff]  ;;  %v291_v5 = vmul.f32 %v590_v0, %v223_v2  ;;  %v292_v6 = vmul.f32 %v590_v0, %v224_v3  ;;  %v256_v8 = vld [vmem:[%s604_s26 + $0x8] sm:$0xff]  ;;  %v293_v9 = vmul.f32 %v590_v0, %v225_v7  ;;  %v226_v10 = vld [vmem:[%s598_s23 + $0x18] sm:$0xff] }
  0x10   : > { %v227_v11 = vld [vmem:[%s598_s23 + $0x20] sm:$0xff]  ;;  %v257_v14 = vld [vmem:[%s604_s26 + $0x10] sm:$0xff]  ;;  %v258_v15 = vld [vmem:[%s604_s26 + $0x18] sm:$0xff]  ;;  %v294_v16 = vmul.f32 %v590_v0, %v226_v10 }
  0x11   : > { %v327_v12 = vadd.f32 %v609_v1, %v291_v5  ;;  %v328_v13 = vadd.f32 %v609_v1, %v292_v6  ;;  %v295_v17 = vmul.f32 %v590_v0, %v227_v11  ;;  %v228_v18 = vld [vmem:[%s598_s23 + $0x28] sm:$0xff]  ;;  %v329_v19 = vadd.f32 %v609_v1, %v293_v9  ;;  %v259_v20 = vld [vmem:[%s604_s26 + $0x20] sm:$0xff]  ;;  %v229_v22 = vld [vmem:[%s598_s23 + $0x30] sm:$0xff] }
  0x12   : > { %v296_v21 = vmul.f32 %v590_v0, %v228_v18  ;;  %v230_v23 = vld [vmem:[%s598_s23 + $0x38] sm:$0xff]  ;;  %v330_v26 = vadd.f32 %v609_v1, %v294_v16  ;;  %v260_v28 = vld [vmem:[%s604_s26 + $0x28] sm:$0xff]  ;;  %v297_v31 = vmul.f32 %v590_v0, %v229_v22  ;;  %v231_v33 = vld [vmem:[%s598_s23 + $0x40] sm:$0xff] }
  0x13   : > { %v359_v24 = vadd.f32 %v327_v12, %v255_v4  ;;  %v360_v25 = vadd.f32 %v328_v13, %v256_v8  ;;  %v331_v27 = vadd.f32 %v609_v1, %v295_v17  ;;  %v361_v29 = vadd.f32 %v329_v19, %v257_v14  ;;  %v232_v34 = vld [vmem:[%s598_s23 + $0x48] sm:$0xff]  ;;  %v261_v39 = vld [vmem:[%s604_s26 + $0x30] sm:$0xff]  ;;  %v262_v40 = vld [vmem:[%s604_s26 + $0x38] sm:$0xff] }
  0x14   : > { %v332_v30 = vadd.f32 %v609_v1, %v296_v21  ;;  %v298_v32 = vmul.f32 %v590_v0, %v230_v23  ;;  %v362_v37 = vadd.f32 %v330_v26, %v258_v15  ;;  %v233_v41 = vld [vmem:[%s598_s23 + $0x50] sm:$0xff]  ;;  %v333_v44 = vadd.f32 %v609_v1, %v297_v31  ;;  %v234_v46 = vld [vmem:[%s598_s23 + $0x58] sm:$0xff]  ;;  %v235_v47 = vld [vmem:[%s598_s23 + $0x60] sm:$0xff] }
  0x15   : > { %v391_v35 = vmax.f32 %v359_v24, 0.0  ;;  %v392_v36 = vmax.f32 %v360_v25, 0.0  ;;  %v363_v38 = vadd.f32 %v331_v27, %v259_v20  ;;  %v393_v42 = vmax.f32 %v361_v29, 0.0  ;;  %v236_v52 = vld [vmem:[%s598_s23 + $0x68] sm:$0xff]  ;;  %v263_v56 = vld [vmem:[%s604_s26 + $0x40] sm:$0xff]  ;;  %v265_v61 = vld [vmem:[%s604_s26 + $0x50] sm:$0xff] }
  0x16   : > { %v364_v43 = vadd.f32 %v332_v30, %v260_v28  ;;  %v334_v45 = vadd.f32 %v609_v1, %v298_v32  ;;  %v394_v48 = vmax.f32 %v362_v37, 0.0  ;;  %v299_v50 = vmul.f32 %v590_v0, %v231_v33  ;;  %v264_v57 = vld [vmem:[%s604_s26 + $0x48] sm:$0xff]  ;;  %v237_v2 = vld [vmem:[%s598_s23 + $0x70] sm:$0xff]  ;;  %v238_v3 = vld [vmem:[%s598_s23 + $0x78] sm:$0xff] }
  0x17   : > { %423 = vst [vmem:[%s640_s5] sm:$0xff] %v391_v35  ;;  %v395_v49 = vmax.f32 %v363_v38, 0.0  ;;  %v300_v51 = vmul.f32 %v590_v0, %v232_v34  ;;  %v365_v54 = vadd.f32 %v333_v44, %v261_v39  ;;  %v301_v58 = vmul.f32 %v590_v0, %v233_v41  ;;  %v266_v7 = vld [vmem:[%s604_s26 + $0x58] sm:$0xff]  ;;  %v267_v8 = vld [vmem:[%s604_s26 + $0x60] sm:$0xff]  ;;  %v268_v14 = vld [vmem:[%s604_s26 + $0x68] sm:$0xff] }
  0x18   : > { %424 = vst [vmem:[%s640_s5 + $0x8] sm:$0xff] %v392_v36  ;;  %v396_v53 = vmax.f32 %v364_v43, 0.0  ;;  %v366_v55 = vadd.f32 %v334_v45, %v262_v40  ;;  %v335_v59 = vadd.f32 %v609_v1, %v299_v50  ;;  %v302_v62 = vmul.f32 %v590_v0, %v234_v46  ;;  %v239_v19 = vld [vmem:[%s598_s23 + $0x80] sm:$0xff]  ;;  %v240_v20 = vld [vmem:[%s598_s23 + $0x88] sm:$0xff]  ;;  %v269_v25 = vld [vmem:[%s604_s26 + $0x70] sm:$0xff] }
  0x19   : > { %425 = vst [vmem:[%s640_s5 + $0x10] sm:$0xff] %v393_v42  ;;  %v336_v60 = vadd.f32 %v609_v1, %v300_v51  ;;  %v303_v63 = vmul.f32 %v590_v0, %v235_v47  ;;  %v397_v4 = vmax.f32 %v365_v54, 0.0  ;;  %v337_v6 = vadd.f32 %v609_v1, %v301_v58  ;;  %v270_v26 = vld [vmem:[%s604_s26 + $0x78] sm:$0xff]  ;;  %v241_v27 = vld [vmem:[%s598_s23 + $0x90] sm:$0xff]  ;;  %v243_v33 = vld [vmem:[%s598_s23 + $0xa0] sm:$0xff] }
  0x1a   : > { %426 = vst [vmem:[%s640_s5 + $0x18] sm:$0xff] %v394_v48  ;;  %v398_v5 = vmax.f32 %v366_v55, 0.0  ;;  %v304_v9 = vmul.f32 %v590_v0, %v236_v52  ;;  %v367_v10 = vadd.f32 %v335_v59, %v263_v56  ;;  %v338_v12 = vadd.f32 %v609_v1, %v302_v62  ;;  %v242_v32 = vld [vmem:[%s598_s23 + $0x98] sm:$0xff]  ;;  %v244_v38 = vld [vmem:[%s598_s23 + $0xa8] sm:$0xff]  ;;  %v271_v42 = vld [vmem:[%s604_s26 + $0x80] sm:$0xff] }
  0x1b   : > { %427 = vst [vmem:[%s640_s5 + $0x20] sm:$0xff] %v395_v49  ;;  %v368_v11 = vadd.f32 %v336_v60, %v264_v57  ;;  %v339_v13 = vadd.f32 %v609_v1, %v303_v63  ;;  %v369_v15 = vadd.f32 %v337_v6, %v265_v61  ;;  %v305_v17 = vmul.f32 %v590_v0, %v237_v2  ;;  %v272_v43 = vld [vmem:[%s604_s26 + $0x88] sm:$0xff]  ;;  %v273_v47 = vld [vmem:[%s604_s26 + $0x90] sm:$0xff]  ;;  %v246_v51 = vld [vmem:[%s598_s23 + $0xb8] sm:$0xff] }
  0x1c   : > { %428 = vst [vmem:[%s640_s5 + $0x28] sm:$0xff] %v396_v53  ;;  %v340_v16 = vadd.f32 %v609_v1, %v304_v9  ;;  %v306_v18 = vmul.f32 %v590_v0, %v238_v3  ;;  %v399_v21 = vmax.f32 %v367_v10, 0.0  ;;  %v370_v23 = vadd.f32 %v338_v12, %v266_v7  ;;  %v245_v50 = vld [vmem:[%s598_s23 + $0xb0] sm:$0xff]  ;;  %v274_v55 = vld [vmem:[%s604_s26 + $0x98] sm:$0xff]  ;;  %v275_v56 = vld [vmem:[%s604_s26 + $0xa0] sm:$0xff] }
  0x1d   : > { %429 = vst [vmem:[%s640_s5 + $0x30] sm:$0xff] %v397_v4  ;;  %v400_v22 = vmax.f32 %v368_v11, 0.0  ;;  %v371_v24 = vadd.f32 %v339_v13, %v267_v8  ;;  %v401_v28 = vmax.f32 %v369_v15, 0.0  ;;  %v341_v30 = vadd.f32 %v609_v1, %v305_v17  ;;  %v276_v62 = vld [vmem:[%s604_s26 + $0xa8] sm:$0xff]  ;;  %v277_v11 = vld [vmem:[%s604_s26 + $0xb0] sm:$0xff]  ;;  %v278_v12 = vld [vmem:[%s604_s26 + $0xb8] sm:$0xff] }
  0x1e   : > { %430 = vst [vmem:[%s640_s5 + $0x38] sm:$0xff] %v398_v5  ;;  %v372_v29 = vadd.f32 %v340_v16, %v268_v14  ;;  %v342_v31 = vadd.f32 %v609_v1, %v306_v18  ;;  %v402_v34 = vmax.f32 %v370_v23, 0.0  ;;  %v307_v36 = vmul.f32 %v590_v0, %v239_v19  ;;  %v247_v5 = vld [vmem:[%s598_s23 + $0xc0] sm:$0xff]  ;;  %v248_v6 = vld [vmem:[%s598_s23 + $0xc8] sm:$0xff]  ;;  %v249_v13 = vld [vmem:[%s598_s23 + $0xd0] sm:$0xff] }
  0x1f   : > { %431 = vst [vmem:[%s640_s5 + $0x40] sm:$0xff] %v399_v21  ;;  %v403_v35 = vmax.f32 %v371_v24, 0.0  ;;  %v308_v37 = vmul.f32 %v590_v0, %v240_v20  ;;  %v373_v40 = vadd.f32 %v341_v30, %v269_v25  ;;  %v309_v44 = vmul.f32 %v590_v0, %v241_v27  ;;  %v250_v18 = vld [vmem:[%s598_s23 + $0xd8] sm:$0xff]  ;;  %v251_v19 = vld [vmem:[%s598_s23 + $0xe0] sm:$0xff]  ;;  %v252_v24 = vld [vmem:[%s598_s23 + $0xe8] sm:$0xff] }
  0x20   : > { %432 = vst [vmem:[%s640_s5 + $0x48] sm:$0xff] %v400_v22  ;;  %v404_v39 = vmax.f32 %v372_v29, 0.0  ;;  %v374_v41 = vadd.f32 %v342_v31, %v270_v26  ;;  %v343_v45 = vadd.f32 %v609_v1, %v307_v36  ;;  %v310_v48 = vmul.f32 %v590_v0, %v242_v32  ;;  %v280_v29 = vld [vmem:[%s604_s26 + $0xc8] sm:$0xff]  ;;  %v253_v36 = vld [vmem:[%s598_s23 + $0xf0] sm:$0xff] }
  0x21   : > { %433 = vst [vmem:[%s640_s5 + $0x50] sm:$0xff] %v401_v28  ;;  %v344_v46 = vadd.f32 %v609_v1, %v308_v37  ;;  %v311_v49 = vmul.f32 %v590_v0, %v243_v33  ;;  %v405_v52 = vmax.f32 %v373_v40, 0.0  ;;  %v345_v54 = vadd.f32 %v609_v1, %v309_v44  ;;  %v279_v28 = vld [vmem:[%s604_s26 + $0xc0] sm:$0xff]  ;;  %v281_v33 = vld [vmem:[%s604_s26 + $0xd0] sm:$0xff]  ;;  %v254_v37 = vld [vmem:[%s598_s23 + $0xf8] sm:$0xff] }
  0x22   : > { %434 = vst [vmem:[%s640_s5 + $0x58] sm:$0xff] %v402_v34  ;;  %v406_v53 = vmax.f32 %v374_v41, 0.0  ;;  %v312_v57 = vmul.f32 %v590_v0, %v244_v38  ;;  %v375_v58 = vadd.f32 %v343_v45, %v271_v42  ;;  %v346_v60 = vadd.f32 %v609_v1, %v310_v48  ;;  %v282_v41 = vld [vmem:[%s604_s26 + $0xd8] sm:$0xff]  ;;  %v283_v42 = vld [vmem:[%s604_s26 + $0xe0] sm:$0xff]  ;;  %v284_v48 = vld [vmem:[%s604_s26 + $0xe8] sm:$0xff] }
  0x23   : > { %435 = vst [vmem:[%s640_s5 + $0x60] sm:$0xff] %v403_v35  ;;  %v376_v59 = vadd.f32 %v344_v46, %v272_v43  ;;  %v347_v61 = vadd.f32 %v609_v1, %v311_v49  ;;  %v377_v63 = vadd.f32 %v345_v54, %v273_v47  ;;  %v313_v3 = vmul.f32 %v590_v0, %v245_v50 }
  0x24   : > { %436 = vst [vmem:[%s640_s5 + $0x68] sm:$0xff] %v404_v39  ;;  %v348_v2 = vadd.f32 %v609_v1, %v312_v57  ;;  %v314_v4 = vmul.f32 %v590_v0, %v246_v51  ;;  %v407_v7 = vmax.f32 %v375_v58, 0.0  ;;  %v378_v9 = vadd.f32 %v346_v60, %v274_v55  ;;  %v285_v57 = vld [vmem:[%s604_s26 + $0xf0] sm:$0xff]  ;;  %v286_v58 = vld [vmem:[%s604_s26 + $0xf8] sm:$0xff] }
  0x25   : > { %437 = vst [vmem:[%s640_s5 + $0x70] sm:$0xff] %v405_v52  ;;  %v408_v8 = vmax.f32 %v376_v59, 0.0  ;;  %v379_v10 = vadd.f32 %v347_v61, %v275_v56  ;;  %v409_v14 = vmax.f32 %v377_v63, 0.0  ;;  %v349_v16 = vadd.f32 %v609_v1, %v313_v3 }
  0x26   : > { %438 = vst [vmem:[%s640_s5 + $0x78] sm:$0xff] %v406_v53  ;;  %v380_v15 = vadd.f32 %v348_v2, %v276_v62  ;;  %v350_v17 = vadd.f32 %v609_v1, %v314_v4  ;;  %v410_v20 = vmax.f32 %v378_v9, 0.0  ;;  %v315_v22 = vmul.f32 %v590_v0, %v247_v5 }
  0x27   : > { %439 = vst [vmem:[%s640_s5 + $0x80] sm:$0xff] %v407_v7  ;;  %v411_v21 = vmax.f32 %v379_v10, 0.0  ;;  %v316_v23 = vmul.f32 %v590_v0, %v248_v6  ;;  %v381_v26 = vadd.f32 %v349_v16, %v277_v11  ;;  %v317_v30 = vmul.f32 %v590_v0, %v249_v13 }
  0x28   : > { %440 = vst [vmem:[%s640_s5 + $0x88] sm:$0xff] %v408_v8  ;;  %v412_v25 = vmax.f32 %v380_v15, 0.0  ;;  %v382_v27 = vadd.f32 %v350_v17, %v278_v12  ;;  %v351_v31 = vadd.f32 %v609_v1, %v315_v22  ;;  %v318_v34 = vmul.f32 %v590_v0, %v250_v18 }
  0x29   : > { %441 = vst [vmem:[%s640_s5 + $0x90] sm:$0xff] %v409_v14  ;;  %v352_v32 = vadd.f32 %v609_v1, %v316_v23  ;;  %v319_v35 = vmul.f32 %v590_v0, %v251_v19  ;;  %v413_v38 = vmax.f32 %v381_v26, 0.0  ;;  %v353_v40 = vadd.f32 %v609_v1, %v317_v30 }
  0x2a   : > { %442 = vst [vmem:[%s640_s5 + $0x98] sm:$0xff] %v410_v20  ;;  %v414_v39 = vmax.f32 %v382_v27, 0.0  ;;  %v320_v43 = vmul.f32 %v590_v0, %v252_v24  ;;  %v383_v44 = vadd.f32 %v351_v31, %v279_v28  ;;  %v354_v46 = vadd.f32 %v609_v1, %v318_v34 }
  0x2b   : > { %443 = vst [vmem:[%s640_s5 + $0xa0] sm:$0xff] %v411_v21  ;;  %v384_v45 = vadd.f32 %v352_v32, %v280_v29  ;;  %v355_v47 = vadd.f32 %v609_v1, %v319_v35  ;;  %v385_v49 = vadd.f32 %v353_v40, %v281_v33  ;;  %v321_v51 = vmul.f32 %v590_v0, %v253_v36 }
  0x2c   : > { %444 = vst [vmem:[%s640_s5 + $0xa8] sm:$0xff] %v412_v25  ;;  %v356_v50 = vadd.f32 %v609_v1, %v320_v43  ;;  %v322_v52 = vmul.f32 %v590_v0, %v254_v37  ;;  %v415_v53 = vmax.f32 %v383_v44, 0.0  ;;  %v386_v55 = vadd.f32 %v354_v46, %v282_v41 }
  0x2d   : > { %445 = vst [vmem:[%s640_s5 + $0xb0] sm:$0xff] %v413_v38  ;;  %v416_v54 = vmax.f32 %v384_v45, 0.0  ;;  %v387_v56 = vadd.f32 %v355_v47, %v283_v42  ;;  %v417_v59 = vmax.f32 %v385_v49, 0.0  ;;  %v357_v61 = vadd.f32 %v609_v1, %v321_v51 }
  0x2e   : > { %446 = vst [vmem:[%s640_s5 + $0xb8] sm:$0xff] %v414_v39  ;;  %v388_v60 = vadd.f32 %v356_v50, %v284_v48  ;;  %v358_v0 = vadd.f32 %v609_v1, %v322_v52  ;;  %v418_v62 = vmax.f32 %v386_v55, 0.0 }
  0x2f   : > { %447 = vst [vmem:[%s640_s5 + $0xc0] sm:$0xff] %v415_v53  ;;  %v419_v63 = vmax.f32 %v387_v56, 0.0  ;;  %v389_v3 = vadd.f32 %v357_v61, %v285_v57 }
  0x30   : > { %448 = vst [vmem:[%s640_s5 + $0xc8] sm:$0xff] %v416_v54  ;;  %v420_v2 = vmax.f32 %v388_v60, 0.0  ;;  %v390_v4 = vadd.f32 %v358_v0, %v286_v58 }
  0x31   : > { %449 = vst [vmem:[%s640_s5 + $0xd0] sm:$0xff] %v417_v59  ;;  %v421_v5 = vmax.f32 %v389_v3, 0.0 }
  0x32   : > { %450 = vst [vmem:[%s640_s5 + $0xd8] sm:$0xff] %v418_v62  ;;  %v422_v6 = vmax.f32 %v390_v4, 0.0 }
  0x33   : > { %451 = vst [vmem:[%s640_s5 + $0xe0] sm:$0xff] %v419_v63 }
  0x34   : > { %452 = vst [vmem:[%s640_s5 + $0xe8] sm:$0xff] %v420_v2 }
  0x35   : > { %453 = vst [vmem:[%s640_s5 + $0xf0] sm:$0xff] %v421_v5 }
  0x36   : > { %454 = vst [vmem:[%s640_s5 + $0xf8] sm:$0xff] %v422_v6 }
  0x37 PF: > { %s14_s15 = sadd.s32 1, %s552_s15  }
  0x38   : > { %p11_p4 = scmp.ge.s32.totalorder %s14_s15, 4  }
  0x3a   :  { %13 = sbr.rel (!%p11_p4) target bundleno = 1 (0x1), region = 69 }

// kernel: external_attention.2
= control target key start
LH: loop header
LB: loop body
LE: loop exit
PB: predicated region body
PF: predicated region fallthrough
CT: control target
= control target key end

     0   :  { %s1864_s21 = smov 0   ;;  %s2530_s0 = inlined_call_operand.vmem [shape: f32[2,256,128], index: 0, kind: input, shape index: {}]   ;;  %s2531_s1 = inlined_call_operand.vmem [shape: bf16[128,128], index: 1, kind: input, shape index: {}]   ;;  %s2532_s2 = inlined_call_operand.vmem [shape: f32[1,128], index: 2, kind: input, shape index: {}]   ;;  %s2533_s3 = inlined_call_operand.vmem [shape: bf16[128,128], index: 3, kind: input, shape index: {}]   ;;  %s2534_s4 = inlined_call_operand.vmem [shape: bf16[128,128], index: 4, kind: input, shape index: {}]   ;;  %s2535_s5 = inlined_call_operand.vmem [shape: f32[2,256,128], index: 5, kind: output, shape index: {0}]   ;;  %s2536_s6 = inlined_call_operand.vmem [shape: f32[2,8,128], index: 6, kind: output, shape index: {1}]  }
   0x1 LB: > { %s1540_s22 = sadd.s32 4294967295, %s1827_s21   ;;  %p1544_p0 = scmp.ge.s32.totalorder %s1827_s21, 1  ;;  %s1827_s21 = sphi %s1864_s21, %s17_s21  }
   0x2   : > { %p215_p1 = scmp.lt.s32.totalorder %s1827_s21, 3 }
   0x4   : > { %p216_p2 = pnand %p1544_p0, %p215_p1 }
   0x5   : > { %p249_p3 = scmp.lt.s32.totalorder (!%p216_p2), %s1540_s22, 1 }
   0x6   : > { %219 = sbr.rel (%p216_p2) target bundleno = 1348 (0x544), region = 40 }
   0xb   : > { %v1657_v0 = vld [vmem:[%s2531_s1 + $0x38] sm:$0xff]  ;;  %v1656_v1 = vld [vmem:[%s2531_s1 + $0x30] sm:$0xff]  ;;  %v1655_v2 = vld [vmem:[%s2531_s1 + $0x28] sm:$0xff]  ;;  %s2538_s22 = smov (!%p249_p3, %s1540_s22), 1  ;;  %vm1449_vm1 = vcmask 1040384   ;;  %vm1451_vm2 = vcmask 1041408  }
   0xc   : > { %379 = vmatpush.bf16.msra.mxu0 %v1657_v0  ;;  %v1654_v3 = vld [vmem:[%s2531_s1 + $0x20] sm:$0xff]  ;;  %v1653_v4 = vld [vmem:[%s2531_s1 + $0x18] sm:$0xff]  ;;  %v1652_v5 = vld [vmem:[%s2531_s1 + $0x10] sm:$0xff]  ;;  %s1648_s11 = sshll.u32 %s2538_s22, 8 }
   0xd   : > { %v1651_v6 = vld [vmem:[%s2531_s1 + $0x8] sm:$0xff]  ;;  %s1901_s16 = scalar_lea.vmem %s2530_s0, %s1648_s11  ;;  %v1650_v7 = vld [vmem:[%s2531_s1] sm:$0xff]  ;;  %v1665_v20 = vld [vmem:[%s2533_s3 + $0x38] sm:$0xff]  ;;  %s2489_s13 = scalar_lea.vmem %s2535_s5, %s1648_s11 }
   0xe   : > { %v263_v8 = vld [vmem:[%s1901_s16] sm:$0xff]  ;;  %v264_v9 = vld [vmem:[%s1901_s16 + $0x8] sm:$0xff]  ;;  %v265_v11 = vld [vmem:[%s1901_s16 + $0x10] sm:$0xff]  ;;  %1674 = vmatpush.bf16.xpose.msra.mxu1 %v1665_v20  ;;  %1053 = vmatpush.bf16.msra.mxu2 %v1665_v20  ;;  %s1549_s11 = sshll.u32 %s2538_s22, 3 }
   0xf   : > { %v295_v10 = vpack.c.bf16 %v264_v9, %v263_v8  ;;  %v266_v12 = vld [vmem:[%s1901_s16 + $0x18] sm:$0xff]  ;;  %v267_v14 = vld [vmem:[%s1901_s16 + $0x20] sm:$0xff]  ;;  %v268_v15 = vld [vmem:[%s1901_s16 + $0x28] sm:$0xff] }
  0x10   : > { %380 = vmatpush.bf16.msra.mxu0 %v1656_v1  ;;  %v296_v13 = vpack.c.bf16 %v266_v12, %v265_v11  ;;  %v297_v16 = vpack.c.bf16 %v268_v15, %v267_v14  ;;  %v269_v17 = vld [vmem:[%s1901_s16 + $0x30] sm:$0xff]  ;;  %v270_v18 = vld [vmem:[%s1901_s16 + $0x38] sm:$0xff]  ;;  %v271_v21 = vld [vmem:[%s1901_s16 + $0x40] sm:$0xff] }
  0x11   : > { %v298_v19 = vpack.c.bf16 %v270_v18, %v269_v17  ;;  %v272_v22 = vld [vmem:[%s1901_s16 + $0x48] sm:$0xff]  ;;  %v1664_v24 = vld [vmem:[%s2533_s3 + $0x30] sm:$0xff]  ;;  %v274_v27 = vld [vmem:[%s1901_s16 + $0x58] sm:$0xff] }
  0x12   : > { %v299_v23 = vpack.c.bf16 %v272_v22, %v271_v21  ;;  %1054 = vmatpush.bf16.msra.mxu2 %v1664_v24  ;;  %v1663_v25 = vld [vmem:[%s2533_s3 + $0x28] sm:$0xff]  ;;  %v273_v26 = vld [vmem:[%s1901_s16 + $0x50] sm:$0xff]  ;;  %v1662_v29 = vld [vmem:[%s2533_s3 + $0x20] sm:$0xff] }
  0x13   : > { %v300_v28 = vpack.c.bf16 %v274_v27, %v273_v26  ;;  %v1661_v30 = vld [vmem:[%s2533_s3 + $0x18] sm:$0xff]  ;;  %v275_v31 = vld [vmem:[%s1901_s16 + $0x60] sm:$0xff]  ;;  %v276_v32 = vld [vmem:[%s1901_s16 + $0x68] sm:$0xff] }
  0x14   : > { %381 = vmatpush.bf16.msra.mxu0 %v1655_v2  ;;  %v301_v33 = vpack.c.bf16 %v276_v32, %v275_v31  ;;  %v1660_v34 = vld [vmem:[%s2533_s3 + $0x10] sm:$0xff]  ;;  %v1659_v35 = vld [vmem:[%s2533_s3 + $0x8] sm:$0xff]  ;;  %v278_v37 = vld [vmem:[%s1901_s16 + $0x78] sm:$0xff] }
  0x15   : > { %v277_v36 = vld [vmem:[%s1901_s16 + $0x70] sm:$0xff]  ;;  %v1658_v39 = vld [vmem:[%s2533_s3] sm:$0xff]  ;;  %v280_v41 = vld [vmem:[%s1901_s16 + $0x88] sm:$0xff] }
  0x16   : > { %1675 = vmatpush.bf16.xpose.msra.mxu1 %v1664_v24  ;;  %1055 = vmatpush.bf16.msra.mxu2 %v1663_v25  ;;  %v302_v38 = vpack.c.bf16 %v278_v37, %v277_v36  ;;  %v279_v40 = vld [vmem:[%s1901_s16 + $0x80] sm:$0xff]  ;;  %v281_v49 = vld [vmem:[%s1901_s16 + $0x90] sm:$0xff]  ;;  %v282_v50 = vld [vmem:[%s1901_s16 + $0x98] sm:$0xff] }
  0x17   : > { %v303_v42 = vpack.c.bf16 %v280_v41, %v279_v40  ;;  %v1951_v44 = vld [vmem:[%s2532_s2] ss:$0 sm:$0xff]  ;;  %v304_v51 = vpack.c.bf16 %v282_v50, %v281_v49  ;;  %v284_v58 = vld [vmem:[%s1901_s16 + $0xa8] sm:$0xff]  ;;  %v285_v1 = vld [vmem:[%s1901_s16 + $0xb0] sm:$0xff] }
  0x18   : > { %382 = vmatpush.bf16.msra.mxu0 %v1654_v3  ;;  %v283_v57 = vld [vmem:[%s1901_s16 + $0xa0] sm:$0xff]  ;;  %v286_v2 = vld [vmem:[%s1901_s16 + $0xb8] sm:$0xff]  ;;  %v289_v17 = vld [vmem:[%s1901_s16 + $0xd0] sm:$0xff] }
  0x19   : > { %v305_v59 = vpack.c.bf16 %v284_v58, %v283_v57  ;;  %v306_v3 = vpack.c.bf16 %v286_v2, %v285_v1  ;;  %v287_v9 = vld [vmem:[%s1901_s16 + $0xc0] sm:$0xff]  ;;  %v290_v18 = vld [vmem:[%s1901_s16 + $0xd8] sm:$0xff]  ;;  %v292_v26 = vld [vmem:[%s1901_s16 + $0xe8] sm:$0xff] }
  0x1a   : > { %1056 = vmatpush.bf16.msra.mxu2 %v1662_v29 }
  0x1c   : > { %383 = vmatpush.bf16.msra.mxu0 %v1653_v4 }
  0x1e   : > { %1676 = vmatpush.bf16.xpose.msra.mxu1 %v1663_v25  ;;  %1057 = vmatpush.bf16.msra.mxu2 %v1661_v30 }
  0x20   : > { %384 = vmatpush.bf16.msra.mxu0 %v1652_v5 }
  0x22   : > { %1058 = vmatpush.bf16.msra.mxu2 %v1660_v34 }
  0x24   : > { %385 = vmatpush.bf16.msra.mxu0 %v1651_v6 }
  0x26   : > { %1677 = vmatpush.bf16.xpose.msra.mxu1 %v1662_v29  ;;  %1059 = vmatpush.bf16.msra.mxu2 %v1659_v35 }
  0x28   : > { %386 = vmatpush.bf16.msra.mxu0 %v1650_v7 }
  0x2a   : > { %1060 = vmatpush.bf16.msra.mxu2 %v1658_v39 }
  0x2b   : > { %387 = vmatmul.bf16.vlgmr.msra.gmra.mxu0 %v295_v10  ;;  %v288_v10 = vld [vmem:[%s1901_s16 + $0xc8] sm:$0xff] }
  0x2c   : > { %548 = vmatpush.bf16.xpose.msrb.mxu0 %v1665_v20  ;;  %v307_v11 = vpack.c.bf16 %v288_v10, %v287_v9 }
  0x2e   : > { %1678 = vmatpush.bf16.xpose.msra.mxu1 %v1661_v30 }
  0x34   : > { %549 = vmatpush.bf16.xpose.msrb.mxu0 %v1664_v24 }
  0x36   : > { %1679 = vmatpush.bf16.xpose.msra.mxu1 %v1660_v34 }
  0x3b   : > { %392 = vmatmul.bf16.gmra.mxu0 %v296_v13 }
  0x3c   : > { %550 = vmatpush.bf16.xpose.msrb.mxu0 %v1663_v25  ;;  %v291_v25 = vld [vmem:[%s1901_s16 + $0xe0] sm:$0xff] }
  0x3d   : > { %v309_v27 = vpack.c.bf16 %v292_v26, %v291_v25 }
  0x3e   : > { %1680 = vmatpush.bf16.xpose.msra.mxu1 %v1659_v35 }
  0x44   : > { %551 = vmatpush.bf16.xpose.msrb.mxu0 %v1662_v29 }
  0x46   : > { %1681 = vmatpush.bf16.xpose.msra.mxu1 %v1658_v39 }
  0x4b   : > { %397 = vmatmul.bf16.gmra.mxu0 %v297_v16 }
  0x4c   : > { %552 = vmatpush.bf16.xpose.msrb.mxu0 %v1661_v30 }
  0x54   : > { %553 = vmatpush.bf16.xpose.msrb.mxu0 %v1660_v34  ;;  %v294_v34 = vld [vmem:[%s1901_s16 + $0xf8] sm:$0xff] }
  0x5b   : > { %402 = vmatmul.bf16.gmra.mxu0 %v298_v19  ;;  %v308_v19 = vpack.c.bf16 %v290_v18, %v289_v17 }
  0x5c   : > { %554 = vmatpush.bf16.xpose.msrb.mxu0 %v1659_v35 }
  0x64   : > { %555 = vmatpush.bf16.xpose.msrb.mxu0 %v1658_v39 }
  0x6b   : > { %407 = vmatmul.bf16.gmra.mxu0 %v299_v23 }
  0x7b   : > { %412 = vmatmul.bf16.gmra.mxu0 %v300_v28 }
  0x8b   : > { %417 = vmatmul.bf16.gmra.mxu0 %v301_v33  ;;  %v293_v33 = vld [vmem:[%s1901_s16 + $0xf0] sm:$0xff]  ;;  %s262_s16 = scalar_lea.vmem %s2536_s6, %s1549_s11 }
  0x8c   : > { %v310_v35 = vpack.c.bf16 %v294_v34, %v293_v33 }
  0x9b   : > { %422 = vmatmul.bf16.gmra.mxu0 %v302_v38 }
  0xa8   : > { %v388_v43 = vpop.f32.mrf.mxu0 }
  0xa9   : > { %v1954_v46 = vadd.f32 %v1951_v44, %v388_v43 }
  0xab   : > { %427 = vmatmul.bf16.gmra.mxu0 %v303_v42 }
  0xb0   : > { %v390_v45 = vpop.f32.mrf.mxu0 }
  0xb1   : > { %v1957_v47 = vadd.f32 %v1951_v44, %v390_v45 }
  0xb3   : > { %v468_v48 = vpack.c.bf16 %v1957_v47, %v1954_v46 }
  0xb8   : > { %v393_v52 = vpop.f32.mrf.mxu0 }
  0xb9   : > { %v394_v54 = vadd.f32 %v1951_v44, %v393_v52 }
  0xbb   : > { %432 = vmatmul.bf16.gmra.mxu0 %v304_v51 }
  0xc0   : > { %v395_v53 = vpop.f32.mrf.mxu0 }
  0xc1   : > { %v396_v55 = vadd.f32 %v1951_v44, %v395_v53 }
  0xc3   : > { %v469_v56 = vpack.c.bf16 %v396_v55, %v394_v54 }
  0xc5   : > { %561 = vmatmul.bf16.vlgmr.msra.gmra.mxu1 %v469_v56 }
  0xc8   : > { %v398_v60 = vpop.f32.mrf.mxu0 }
  0xc9   : > { %v399_v62 = vadd.f32 %v1951_v44, %v398_v60 }
  0xcb   : > { %437 = vmatmul.bf16.gmra.mxu0 %v305_v59 }
  0xd0   : > { %v400_v61 = vpop.f32.mrf.mxu0 }
  0xd1   : > { %v401_v63 = vadd.f32 %v1951_v44, %v400_v61 }
  0xd3   : > { %v470_v0 = vpack.c.bf16 %v401_v63, %v399_v62 }
  0xd5   : > { %566 = vmatmul.bf16.gmra.mxu1 %v470_v0 }
  0xd8   : > { %v403_v4 = vpop.f32.mrf.mxu0 }
  0xd9   : > { %v404_v6 = vadd.f32 %v1951_v44, %v403_v4 }
  0xdb   : > { %442 = vmatmul.bf16.gmra.mxu0 %v306_v3 }
  0xe0   : > { %v405_v5 = vpop.f32.mrf.mxu0 }
  0xe1   : > { %v406_v7 = vadd.f32 %v1951_v44, %v405_v5 }
  0xe3   : > { %v471_v8 = vpack.c.bf16 %v406_v7, %v404_v6 }
  0xe5   : > { %571 = vmatmul.bf16.gmra.mxu1 %v471_v8 }
  0xe8   : > { %v408_v12 = vpop.f32.mrf.mxu0 }
  0xe9   : > { %v409_v14 = vadd.f32 %v1951_v44, %v408_v12 }
  0xeb   : > { %447 = vmatmul.bf16.gmra.mxu0 %v307_v11 }
  0xf0   : > { %v410_v13 = vpop.f32.mrf.mxu0 }
  0xf1   : > { %v411_v15 = vadd.f32 %v1951_v44, %v410_v13 }
  0xf3   : > { %v472_v16 = vpack.c.bf16 %v411_v15, %v409_v14 }
  0xf5   : > { %576 = vmatmul.bf16.gmra.mxu1 %v472_v16 }
  0xf8   : > { %v413_v20 = vpop.f32.mrf.mxu0 }
  0xf9   : > { %v414_v22 = vadd.f32 %v1951_v44, %v413_v20 }
  0xfb   : > { %452 = vmatmul.bf16.gmra.mxu0 %v308_v19 }
 0x100   : > { %v415_v21 = vpop.f32.mrf.mxu0 }
 0x101   : > { %v416_v23 = vadd.f32 %v1951_v44, %v415_v21 }
 0x103   : > { %v473_v24 = vpack.c.bf16 %v416_v23, %v414_v22 }
 0x105   : > { %581 = vmatmul.bf16.gmra.mxu1 %v473_v24 }
 0x108   : > { %v418_v28 = vpop.f32.mrf.mxu0 }
 0x109   : > { %v419_v30 = vadd.f32 %v1951_v44, %v418_v28 }
 0x10b   : > { %457 = vmatmul.bf16.gmra.mxu0 %v309_v27 }
 0x110   : > { %v420_v29 = vpop.f32.mrf.mxu0 }
 0x111   : > { %v421_v31 = vadd.f32 %v1951_v44, %v420_v29 }
 0x113   : > { %v474_v32 = vpack.c.bf16 %v421_v31, %v419_v30 }
 0x115   : > { %586 = vmatmul.bf16.gmra.mxu1 %v474_v32 }
 0x118   : > { %v423_v36 = vpop.f32.mrf.mxu0 }
 0x119   : > { %v424_v38 = vadd.f32 %v1951_v44, %v423_v36 }
 0x11b   : > { %462 = vmatmul.bf16.gmra.mxu0 %v310_v35 }
 0x120   : > { %v425_v37 = vpop.f32.mrf.mxu0 }
 0x121   : > { %v426_v39 = vadd.f32 %v1951_v44, %v425_v37 }
 0x123   : > { %v475_v40 = vpack.c.bf16 %v426_v39, %v424_v38 }
 0x125   : > { %591 = vmatmul.bf16.gmra.mxu1 %v475_v40 }
 0x128   : > { %v428_v41 = vpop.f32.mrf.mxu0 }
 0x129   : > { %v429_v43 = vadd.f32 %v1951_v44, %v428_v41 }
 0x12b   : > { %556 = vmatmul.bf16.vlgmr.msrb.gmra.mxu0 %v468_v48 }
 0x130   : > { %v430_v42 = vpop.f32.mrf.mxu0 }
 0x131   : > { %v431_v45 = vadd.f32 %v1951_v44, %v430_v42 }
 0x133   : > { %v476_v49 = vpack.c.bf16 %v431_v45, %v429_v43 }
 0x135   : > { %596 = vmatmul.bf16.gmra.mxu1 %v476_v49 }
 0x138   : > { %v433_v50 = vpop.f32.mrf.mxu0 }
 0x139   : > { %v434_v52 = vadd.f32 %v1951_v44, %v433_v50 }
 0x140   : > { %v435_v51 = vpop.f32.mrf.mxu0 }
 0x141   : > { %v436_v53 = vadd.f32 %v1951_v44, %v435_v51 }
 0x142   : > { %v1996_v54 = vpop.f32.mrf.mxu1 }
 0x143   : > { %v477_v55 = vpack.c.bf16 %v436_v53, %v434_v52 }
 0x145   : > { %601 = vmatmul.bf16.gmra.mxu1 %v477_v55 }
 0x148   : > { %v438_v56 = vpop.f32.mrf.mxu0 }
 0x149   : > { %v439_v48 = vadd.f32 %v1951_v44, %v438_v56 }
 0x14a   : > { %v1998_v46 = vpop.f32.mrf.mxu1 }
 0x150   : > { %v440_v47 = vpop.f32.mrf.mxu0 }
 0x151   : > { %v441_v57 = vadd.f32 %v1951_v44, %v440_v47 }
 0x152   : > { %v2002_v58 = vpop.f32.mrf.mxu1 }
 0x153   : > { %v478_v59 = vpack.c.bf16 %v441_v57, %v439_v48 }
 0x155   : > { %606 = vmatmul.bf16.gmra.mxu1 %v478_v59 }
 0x158   : > { %v443_v60 = vpop.f32.mrf.mxu0 }
 0x159   : > { %v444_v63 = vadd.f32 %v1951_v44, %v443_v60 }
 0x15a   : > { %v2004_v61 = vpop.f32.mrf.mxu1 }
 0x160   : > { %v445_v62 = vpop.f32.mrf.mxu0 }
 0x161   : > { %v446_v0 = vadd.f32 %v1951_v44, %v445_v62 }
 0x162   : > { %v2008_v1 = vpop.f32.mrf.mxu1 }
 0x163   : > { %v479_v2 = vpack.c.bf16 %v446_v0, %v444_v63  ;;  %v639_v55 = vmax.f32 %v1996_v54, %v2008_v1 }
 0x165   : > { %611 = vmatmul.bf16.gmra.mxu1 %v479_v2 }
 0x168   : > { %v448_v3 = vpop.f32.mrf.mxu0 }
 0x169   : > { %v449_v6 = vadd.f32 %v1951_v44, %v448_v3 }
 0x16a   : > { %v2010_v4 = vpop.f32.mrf.mxu1 }
 0x16b   : > { %v640_v56 = vmax.f32 %v1998_v46, %v2010_v4 }
 0x170   : > { %v450_v5 = vpop.f32.mrf.mxu0 }
 0x171   : > { %v451_v7 = vadd.f32 %v1951_v44, %v450_v5 }
 0x172   : > { %v2014_v8 = vpop.f32.mrf.mxu1 }
 0x173   : > { %v480_v9 = vpack.c.bf16 %v451_v7, %v449_v6 }
 0x175   : > { %616 = vmatmul.bf16.gmra.mxu1 %v480_v9 }
 0x178   : > { %v453_v10 = vpop.f32.mrf.mxu0 }
 0x179   : > { %v454_v13 = vadd.f32 %v1951_v44, %v453_v10 }
 0x17a   : > { %v2016_v11 = vpop.f32.mrf.mxu1 }
 0x180   : > { %v455_v12 = vpop.f32.mrf.mxu0 }
 0x181   : > { %v456_v14 = vadd.f32 %v1951_v44, %v455_v12 }
 0x182   : > { %v2020_v15 = vpop.f32.mrf.mxu1 }
 0x183   : > { %v481_v16 = vpack.c.bf16 %v456_v14, %v454_v13  ;;  %v643_v48 = vmax.f32 %v639_v55, %v2020_v15 }
 0x185   : > { %621 = vmatmul.bf16.gmra.mxu1 %v481_v16 }
 0x188   : > { %v458_v17 = vpop.f32.mrf.mxu0 }
 0x189   : > { %v459_v20 = vadd.f32 %v1951_v44, %v458_v17 }
 0x18a   : > { %v2022_v18 = vpop.f32.mrf.mxu1 }
 0x18b   : > { %v644_v57 = vmax.f32 %v640_v56, %v2022_v18 }
 0x190   : > { %v460_v19 = vpop.f32.mrf.mxu0 }
 0x191   : > { %v461_v21 = vadd.f32 %v1951_v44, %v460_v19 }
 0x192   : > { %v2026_v22 = vpop.f32.mrf.mxu1 }
 0x193   : > { %v482_v23 = vpack.c.bf16 %v461_v21, %v459_v20 }
 0x195   : > { %626 = vmatmul.bf16.gmra.mxu1 %v482_v23 }
 0x198   : > { %v463_v24 = vpop.f32.mrf.mxu0 }
 0x199   : > { %v464_v27 = vadd.f32 %v1951_v44, %v463_v24 }
 0x19a   : > { %v2028_v25 = vpop.f32.mrf.mxu1 }
 0x1a0   : > { %v465_v26 = vpop.f32.mrf.mxu0 }
 0x1a1   : > { %v466_v28 = vadd.f32 %v1951_v44, %v465_v26 }
 0x1a2   : > { %v2032_v29 = vpop.f32.mrf.mxu1 }
 0x1a3   : > { %v483_v30 = vpack.c.bf16 %v466_v28, %v464_v27  ;;  %v647_v62 = vmax.f32 %v643_v48, %v2032_v29 }
 0x1a5   : > { %631 = vmatmul.bf16.gmra.mxu1 %v483_v30 }
 0x1a8   : > { %v557_v43 = vpop.f32.mrf.mxu0 }
 0x1a9   : > { %v637_v52 = vmax.f32 %v557_v43, %v2002_v58 }
 0x1aa   : > { %v2034_v31 = vpop.f32.mrf.mxu1 }
 0x1ab   : > { %v641_v47 = vmax.f32 %v637_v52, %v2014_v8  ;;  %v648_v63 = vmax.f32 %v644_v57, %v2034_v31 }
 0x1ad   : > { %v645_v0 = vmax.f32 %v641_v47, %v2026_v22 }
 0x1b0   : > { %v559_v49 = vpop.f32.mrf.mxu0 }
 0x1b1   : > { %v638_v50 = vmax.f32 %v559_v49, %v2004_v61 }
 0x1b2   : > { %v2036_v32 = vpop.f32.mrf.mxu1 }
 0x1b3   : > { %v642_v53 = vmax.f32 %v638_v50, %v2016_v11  ;;  %v649_v3 = vmax.f32 %v645_v0, %v2036_v32 }
 0x1b5   : > { %v646_v59 = vmax.f32 %v642_v53, %v2028_v25 }
 0x1ba   : > { %v2038_v33 = vpop.f32.mrf.mxu1 }
 0x1bb   : > { %v650_v2 = vmax.f32 %v646_v59, %v2038_v33 }
 0x1c2   : > { %v2040_v34 = vpop.f32.mrf.mxu1 }
 0x1c3   : > { %v651_v5 = vmax.f32 %v647_v62, %v2040_v34 }
 0x1ca   : > { %v2042_v35 = vpop.f32.mrf.mxu1 }
 0x1cb   : > { %v652_v6 = vmax.f32 %v648_v63, %v2042_v35 }
 0x1d2   : > { %v2044_v36 = vpop.f32.mrf.mxu1 }
 0x1d3   : > { %v653_v9 = vmax.f32 %v649_v3, %v2044_v36 }
 0x1da   : > { %v2046_v37 = vpop.f32.mrf.mxu1 }
 0x1db   : > { %v654_v7 = vmax.f32 %v650_v2, %v2046_v37 }
 0x1e2   : > { %v2048_v38 = vpop.f32.mrf.mxu1 }
 0x1e3   : > { %v655_v10 = vmax.f32 %v651_v5, %v2048_v38 }
 0x1ea   : > { %v2050_v44 = vpop.f32.mrf.mxu1 }
 0x1eb   : > { %v656_v12 = vmax.f32 %v652_v6, %v2050_v44 }
 0x1f2   : > { %v2052_v39 = vpop.f32.mrf.mxu1 }
 0x1f3   : > { %v657_v14 = vmax.f32 %v653_v9, %v2052_v39 }
 0x1fa   : > { %v2054_v40 = vpop.f32.mrf.mxu1 }
 0x1fb   : > { %v658_v13 = vmax.f32 %v654_v7, %v2054_v40 }
 0x202   : > { %v2056_v41 = vpop.f32.mrf.mxu1 }
 0x203   : > { %v659_v16 = vmax.f32 %v655_v10, %v2056_v41 }
 0x20a   : > { %v2058_v42 = vpop.f32.mrf.mxu1 }
 0x20b   : > { %v660_v17 = vmax.f32 %v656_v12, %v2058_v42 }
 0x212   : > { %v2060_v45 = vpop.f32.mrf.mxu1 }
 0x213   : > { %v661_v21 = vmax.f32 %v657_v14, %v2060_v45 }
 0x21a   : > { %v2063_v51 = vpop.f32.mrf.mxu1 }
 0x21b   : > { %v662_v19 = vmax.f32 %v658_v13, %v2063_v51 }
 0x21d   : > { %v665_v26 = vmax.f32 %v661_v21, %v662_v19 }
 0x222   : > { %v2075_v60 = vpop.f32.mrf.mxu1 }
 0x223   : > { %v663_v23 = vmax.f32 %v659_v16, %v2075_v60 }
 0x22a   : > { %v2093_v20 = vpop.f32.mrf.mxu1 }
 0x22b   : > { %v664_v24 = vmax.f32 %v660_v17, %v2093_v20 }
 0x22d   : > { %v666_v27 = vmax.f32 %v663_v23, %v664_v24 }
 0x22f   : > { %v667_v28 = vmax.f32 %v665_v26, %v666_v27 }
 0x231   : > { %v668_v30 = vrot.slane %v667_v28, 4 }
 0x233   : > { %v669_v50 = vmax.f32 %v667_v28, %v668_v30 }
 0x235   : > { %v670_v52 = vrot.slane %v669_v50, 2 }
 0x237   : > { %v671_v53 = vmax.f32 %v669_v50, %v670_v52 }
 0x239   : > { %v672_v55 = vrot.slane %v671_v53, 1 }
 0x23b   : > { %v2098_v56 = vmax.f32 %v671_v53, %v672_v55 }
 0x23d   : > { %v674_v47 = vsub.f32 %v557_v43, %v2098_v56  ;;  %v675_v48 = vsub.f32 %v559_v49, %v2098_v56  ;;  %v676_v57 = vsub.f32 %v1996_v54, %v2098_v56  ;;  %v677_v59 = vsub.f32 %v1998_v46, %v2098_v56 }
 0x23e   : > { %v678_v0 = vsub.f32 %v2002_v58, %v2098_v56  ;;  %v679_v3 = vsub.f32 %v2004_v61, %v2098_v56  ;;  %v680_v49 = vsub.f32 %v2008_v1, %v2098_v56  ;;  %v681_v46 = vsub.f32 %v2010_v4, %v2098_v56 }
 0x23f   : > { %v706_v62 = vmul.f32 1.442695, %v674_v47  ;;  %v708_v63 = vmul.f32 1.442695, %v675_v48  ;;  %v710_v2 = vmul.f32 1.442695, %v676_v57  ;;  %v682_v7 = vsub.f32 %v2014_v8, %v2098_v56 }
 0x240   : > { %v712_v43 = vmul.f32 1.442695, %v677_v59  ;;  %v714_v54 = vmul.f32 1.442695, %v678_v0  ;;  %v716_v5 = vmul.f32 1.442695, %v679_v3  ;;  %v683_v10 = vsub.f32 %v2016_v11, %v2098_v56 }
 0x241   : > { %1691 = vpow2.f32 %v706_v62  ;;  %v718_v61 = vmul.f32 1.442695, %v680_v49  ;;  %v720_v4 = vmul.f32 1.442695, %v681_v46  ;;  %v684_v14 = vsub.f32 %v2020_v15, %v2098_v56 }
 0x242   : > { %1693 = vpow2.f32 %v708_v63  ;;  %v722_v8 = vmul.f32 1.442695, %v682_v7  ;;  %v685_v19 = vsub.f32 %v2022_v18, %v2098_v56  ;;  %v724_v11 = vmul.f32 1.442695, %v683_v10 }
 0x243   : > { %1695 = vpow2.f32 %v710_v2  ;;  %v686_v24 = vsub.f32 %v2026_v22, %v2098_v56  ;;  %v726_v15 = vmul.f32 1.442695, %v684_v14  ;;  %v687_v28 = vsub.f32 %v2028_v25, %v2098_v56 }
 0x244   : > { %1697 = vpow2.f32 %v712_v43  ;;  %v728_v18 = vmul.f32 1.442695, %v685_v19  ;;  %v688_v52 = vsub.f32 %v2032_v29, %v2098_v56  ;;  %v689_v47 = vsub.f32 %v2034_v31, %v2098_v56 }
 0x245   : > { %1699 = vpow2.f32 %v714_v54  ;;  %v730_v22 = vmul.f32 1.442695, %v686_v24  ;;  %v732_v25 = vmul.f32 1.442695, %v687_v28  ;;  %v690_v59 = vsub.f32 %v2036_v32, %v2098_v56 }
 0x246   : > { %1701 = vpow2.f32 %v716_v5  ;;  %v734_v29 = vmul.f32 1.442695, %v688_v52  ;;  %v691_v0 = vsub.f32 %v2038_v33, %v2098_v56  ;;  %v736_v31 = vmul.f32 1.442695, %v689_v47 }
 0x247   : > { %v2114_v6 = vpop.eup %1691  ;;  %1703 = vpow2.f32 %v718_v61  ;;  %v692_v43 = vsub.f32 %v2040_v34, %v2098_v56  ;;  %v738_v32 = vmul.f32 1.442695, %v690_v59  ;;  %v693_v46 = vsub.f32 %v2042_v35, %v2098_v56 }
 0x248   : > { %v2116_v58 = vpop.eup %1693  ;;  %1705 = vpow2.f32 %v720_v4  ;;  %v740_v33 = vmul.f32 1.442695, %v691_v0  ;;  %v694_v61 = vsub.f32 %v2044_v36, %v2098_v56  ;;  %v695_v4 = vsub.f32 %v2046_v37, %v2098_v56 }
 0x249   : > { %v770_v9 = vadd.f32 %v2116_v58, %v2114_v6  ;;  %v2122_v1 = vpop.eup %1695  ;;  %1707 = vpow2.f32 %v722_v8  ;;  %v742_v34 = vmul.f32 1.442695, %v692_v43  ;;  %v744_v35 = vmul.f32 1.442695, %v693_v46 }
 0x24a   : > { %v2127_v13 = vpop.eup %1697  ;;  %1709 = vpow2.f32 %v724_v11  ;;  %v696_v8 = vsub.f32 %v2048_v38, %v2098_v56  ;;  %v746_v36 = vmul.f32 1.442695, %v694_v61  ;;  %v697_v11 = vsub.f32 %v2050_v44, %v2098_v56 }
 0x24b   : > { %v771_v12 = vadd.f32 %v2122_v1, %v770_v9  ;;  %v2132_v17 = vpop.eup %1699  ;;  %1711 = vpow2.f32 %v726_v15  ;;  %v748_v37 = vmul.f32 1.442695, %v695_v4  ;;  %v698_v15 = vsub.f32 %v2052_v39, %v2098_v56 }
 0x24c   : > { %v2137_v23 = vpop.eup %1701  ;;  %1713 = vpow2.f32 %v728_v18  ;;  %v750_v38 = vmul.f32 1.442695, %v696_v8  ;;  %v699_v18 = vsub.f32 %v2054_v40, %v2098_v56  ;;  %v752_v44 = vmul.f32 1.442695, %v697_v11 }
 0x24d   : > { %v772_v16 = vadd.f32 %v2127_v13, %v771_v12  ;;  %v2142_v27 = vpop.eup %1703  ;;  %1715 = vpow2.f32 %v730_v22  ;;  %v700_v22 = vsub.f32 %v2056_v41, %v2098_v56  ;;  %v754_v39 = vmul.f32 1.442695, %v698_v15 }
 0x24e   : > { %v2147_v50 = vpop.eup %1705  ;;  %1717 = vpow2.f32 %v732_v25  ;;  %v701_v25 = vsub.f32 %v2058_v42, %v2098_v56  ;;  %v756_v40 = vmul.f32 1.442695, %v699_v18 }
 0x24f   : > { %v773_v21 = vadd.f32 %v2132_v17, %v772_v16  ;;  %v2152_v55 = vpop.eup %1707  ;;  %1719 = vpow2.f32 %v734_v29  ;;  %v702_v29 = vsub.f32 %v2060_v45, %v2098_v56  ;;  %v758_v41 = vmul.f32 1.442695, %v700_v22 }
 0x250   : > { %v2157_v57 = vpop.eup %1709  ;;  %1721 = vpow2.f32 %v736_v31  ;;  %v703_v31 = vsub.f32 %v2063_v51, %v2098_v56  ;;  %v760_v42 = vmul.f32 1.442695, %v701_v25 }
 0x251   : > { %v774_v26 = vadd.f32 %v2137_v23, %v773_v21  ;;  %v2162_v63 = vpop.eup %1711  ;;  %1723 = vpow2.f32 %v738_v32  ;;  %v704_v32 = vsub.f32 %v2075_v60, %v2098_v56 }
 0x252   : > { %v2167_v3 = vpop.eup %1713  ;;  %1725 = vpow2.f32 %v740_v33  ;;  %v705_v33 = vsub.f32 %v2093_v20, %v2098_v56 }
 0x253   : > { %v775_v30 = vadd.f32 %v2142_v27, %v774_v26  ;;  %v2172_v54 = vpop.eup %1715  ;;  %1727 = vpow2.f32 %v742_v34  ;;  %v766_v34 = vmul.f32 1.442695, %v704_v32 }
 0x254   : > { %v2177_v7 = vpop.eup %1717  ;;  %1729 = vpow2.f32 %v744_v35  ;;  %v768_v60 = vmul.f32 1.442695, %v705_v33 }
 0x255   : > { %v776_v53 = vadd.f32 %v2147_v50, %v775_v30  ;;  %v2182_v10 = vpop.eup %1719  ;;  %1731 = vpow2.f32 %v746_v36 }
 0x256   : > { %v2187_v14 = vpop.eup %1721  ;;  %1733 = vpow2.f32 %v748_v37 }
 0x257   : > { %v777_v48 = vadd.f32 %v2152_v55, %v776_v53  ;;  %v2192_v19 = vpop.eup %1723  ;;  %1735 = vpow2.f32 %v750_v38 }
 0x258   : > { %v2197_v24 = vpop.eup %1725  ;;  %1737 = vpow2.f32 %v752_v44 }
 0x259   : > { %v778_v62 = vadd.f32 %v2157_v57, %v777_v48  ;;  %v2202_v28 = vpop.eup %1727  ;;  %1739 = vpow2.f32 %v754_v39  ;;  %v840_v39 = vlaneseq }
 0x25a   : > { %v2207_v52 = vpop.eup %1729  ;;  %1741 = vpow2.f32 %v756_v40 }
 0x25b   : > { %v779_v2 = vadd.f32 %v2162_v63, %v778_v62  ;;  %v2212_v47 = vpop.eup %1731  ;;  %1743 = vpow2.f32 %v758_v41 }
 0x25c   : > { %v2217_v59 = vpop.eup %1733  ;;  %1745 = vpow2.f32 %v760_v42 }
 0x25d   : > { %v780_v49 = vadd.f32 %v2167_v3, %v779_v2  ;;  %v2222_v0 = vpop.eup %1735 }
 0x25e   : > { %v1738_v43 = vpop.eup %1737 }
 0x25f   : > { %v781_v5 = vadd.f32 %v2172_v54, %v780_v49  ;;  %v762_v49 = vmul.f32 1.442695, %v702_v29  ;;  %v2229_v46 = vpop.eup %1739 }
 0x260   : > { %v2234_v61 = vpop.eup %1741 }
 0x261   : > { %v782_v9 = vadd.f32 %v2177_v7, %v781_v5  ;;  %v764_v5 = vmul.f32 1.442695, %v703_v31  ;;  %1747 = vpow2.f32 %v762_v49  ;;  %v1744_v4 = vpop.eup %1743 }
 0x263   : > { %v783_v12 = vadd.f32 %v2182_v10, %v782_v9  ;;  %1749 = vpow2.f32 %v764_v5 }
 0x264   : > { %1751 = vpow2.f32 %v766_v34 }
 0x265   : > { %v784_v16 = vadd.f32 %v2187_v14, %v783_v12  ;;  %v1746_v12 = vpop.eup %1745  ;;  %1753 = vpow2.f32 %v768_v60 }
 0x267   : > { %v785_v21 = vadd.f32 %v2192_v19, %v784_v16  ;;  %v1748_v36 = vpop.eup %1747 }
 0x269   : > { %v786_v26 = vadd.f32 %v2197_v24, %v785_v21  ;;  %v1750_v56 = vpop.eup %1749 }
 0x26a   : > { %v1752_v11 = vpop.eup %1751 }
 0x26b   : > { %v787_v30 = vadd.f32 %v2202_v28, %v786_v26  ;;  %v1754_v21 = vpop.eup %1753 }
 0x26d   : > { %v788_v53 = vadd.f32 %v2207_v52, %v787_v30 }
 0x26f   : > { %v789_v48 = vadd.f32 %v2212_v47, %v788_v53  ;;  %v2237_v53 = vand.u32 127, %v840_v39 }
 0x271   : > { %v790_v62 = vadd.f32 %v2217_v59, %v789_v48  ;;  %vm842_vm0 = vcmp.lt.s32.totalorder %v2237_v53, 64 }
 0x273   : > { %v791_v2 = vadd.f32 %v2222_v0, %v790_v62 }
 0x275   : > { %v792_v45 = vadd.f32 %v1738_v43, %v791_v2 }
 0x277   : > { %v793_v51 = vadd.f32 %v2229_v46, %v792_v45 }
 0x279   : > { %v794_v9 = vadd.f32 %v2234_v61, %v793_v51 }
 0x27b   : > { %v795_v35 = vadd.f32 %v1744_v4, %v794_v9 }
 0x27d   : > { %v796_v8 = vadd.f32 %v1746_v12, %v795_v35 }
 0x27f   : > { %v797_v20 = vadd.f32 %v1748_v36, %v796_v8 }
 0x281   : > { %v798_v16 = vadd.f32 %v1750_v56, %v797_v20 }
 0x283   : > { %v799_v37 = vadd.f32 %v1752_v11, %v798_v16 }
 0x285   : > { %v800_v15 = vadd.f32 %v1754_v21, %v799_v37 }
 0x287   : > { %v801_v38 = vrot.slane %v800_v15, 4 }
 0x289   : > { %v802_v26 = vadd.f32 %v801_v38, %v800_v15 }
 0x28b   : > { %v803_v18 = vrot.slane %v802_v26, 2 }
 0x28d   : > { %v804_v44 = vadd.f32 %v803_v18, %v802_v26 }
 0x28f   : > { %v805_v30 = vrot.slane %v804_v44, 1 }
 0x291   : > { %v806_v22 = vadd.f32 %v805_v30, %v804_v44 }
 0x293   : > { %1755 = vrcp.f32 %v806_v22 }
 0x299   : > { %v1756_v25 = vpop.eup %1755 }
 0x29a   : > { %v812_v40 = vmul.f32 %v1756_v25, %v2132_v17  ;;  %v810_v48 = vmul.f32 %v1756_v25, %v2122_v1  ;;  %v808_v29 = vmul.f32 %v1756_v25, %v2114_v6  ;;  %v822_v6 = vmul.f32 %v1756_v25, %v2182_v10 }
 0x29b   : > { %v821_v1 = vmul.f32 %v1756_v25, %v2177_v7  ;;  %v820_v17 = vmul.f32 %v1756_v25, %v2172_v54  ;;  %v825_v42 = vmul.f32 %v1756_v25, %v2197_v24  ;;  %v813_v2 = vmul.f32 %v1756_v25, %v2137_v23 }
 0x29c   : > { %v2245_v41 = vsel %vm842_vm0, %v812_v40, 0.0  ;;  %v2249_v62 = vsel %vm842_vm0, %v810_v48, 0.0  ;;  %v2253_v31 = vsel %vm842_vm0, %v808_v29, 0.0  ;;  %v811_v32 = vmul.f32 %v1756_v25, %v2127_v13 }
 0x29d   : > { %885 = vadd.xlane.f32.xlu2 %v2245_v41  ;;  %881 = vadd.xlane.f32.xlu1 %v2249_v62  ;;  %v809_v49 = vmul.f32 %v1756_v25, %v2116_v58  ;;  %v824_v45 = vmul.f32 %v1756_v25, %v2192_v19  ;;  %v823_v33 = vmul.f32 %v1756_v25, %v2187_v14  ;;  %v2276_v13 = vsel %vm842_vm0, %v813_v2, 0.0 }
 0x29e   : > { %877 = vadd.xlane.f32.xlu0 %v2253_v31  ;;  %v828_v5 = vmul.f32 %v1756_v25, %v2212_v47  ;;  %v827_v10 = vmul.f32 %v1756_v25, %v2207_v52  ;;  %v826_v7 = vmul.f32 %v1756_v25, %v2202_v28  ;;  %v831_v51 = vmul.f32 %v1756_v25, %v1738_v43 }
 0x29f   : > { %v830_v54 = vmul.f32 %v1756_v25, %v2222_v0  ;;  %v2272_v24 = vmul.f32 %v1756_v25, %v2217_v59  ;;  %v2280_v58 = vsel %vm842_vm0, %v811_v32, 0.0  ;;  %v2286_v23 = vsel %vm842_vm0, %v809_v49, 0.0 }
 0x2a0   : > { %v816_v14 = vmul.f32 %v1756_v25, %v2152_v55  ;;  %v815_v19 = vmul.f32 %v1756_v25, %v2147_v50  ;;  %v814_v28 = vmul.f32 %v1756_v25, %v2142_v27  ;;  %v834_v52 = vmul.f32 %v1756_v25, %v1744_v4 }
 0x2a1   : > { %v833_v47 = vmul.f32 %v1756_v25, %v2234_v61  ;;  %v832_v59 = vmul.f32 %v1756_v25, %v2229_v46  ;;  %v837_v0 = vmul.f32 %v1756_v25, %v1750_v56  ;;  %v836_v43 = vmul.f32 %v1756_v25, %v1748_v36 }
 0x2a2   : > { %v835_v34 = vmul.f32 %v1756_v25, %v1746_v12  ;;  %v839_v9 = vmul.f32 %v1756_v25, %v1754_v21  ;;  %v838_v60 = vmul.f32 %v1756_v25, %v1752_v11  ;;  %v2296_v35 = vsel %vm842_vm0, %v834_v52, 0.0 }
 0x2a3   : > { %v2300_v50 = vsel %vm842_vm0, %v833_v47, 0.0  ;;  %v2304_v27 = vsel %vm842_vm0, %v832_v59, 0.0  ;;  %v2308_v55 = vsel %vm842_vm0, %v837_v0, 0.0  ;;  %v2312_v46 = vsel %vm842_vm0, %v836_v43, 0.0 }
 0x2a4   : > { %v2316_v61 = vsel %vm842_vm0, %v835_v34, 0.0  ;;  %v2320_v4 = vsel %vm842_vm0, %v839_v9, 0.0  ;;  %v2324_v12 = vsel %vm842_vm0, %v838_v60, 0.0  ;;  %v2328_v8 = vsel %vm842_vm0, %v816_v14, 0.0 }
 0x2a5   : > { %887 = vadd.xlane.f32.xlu2 %v2276_v13  ;;  %883 = vadd.xlane.f32.xlu1 %v2280_v58  ;;  %v2332_v36 = vsel %vm842_vm0, %v815_v19, 0.0  ;;  %v2338_v20 = vsel %vm842_vm0, %v814_v28, 0.0  ;;  %v819_v56 = vmul.f32 %v1756_v25, %v2167_v3  ;;  %v818_v16 = vmul.f32 %v1756_v25, %v2162_v63 }
 0x2a6   : > { %879 = vadd.xlane.f32.xlu0 %v2286_v23  ;;  %v817_v11 = vmul.f32 %v1756_v25, %v2157_v57  ;;  %v2361_v57 = vsel %vm842_vm0, %v822_v6, 0.0  ;;  %v2365_v63 = vsel %vm842_vm0, %v821_v1, 0.0  ;;  %v2371_v3 = vsel %vm842_vm0, %v820_v17, 0.0 }
 0x2a7   : > { %v2346_v37 = vsel %vm842_vm0, %v819_v56, 0.0  ;;  %v2350_v21 = vsel %vm842_vm0, %v818_v16, 0.0  ;;  %v2376_v38 = vsel %vm842_vm0, %v825_v42, 0.0  ;;  %v2380_v26 = vsel %vm842_vm0, %v824_v45, 0.0 }
 0x2a8   : > { %v2356_v15 = vsel %vm842_vm0, %v817_v11, 0.0  ;;  %v2386_v18 = vsel %vm842_vm0, %v823_v33, 0.0  ;;  %v2391_v44 = vsel %vm842_vm0, %v828_v5, 0.0  ;;  %v2395_v30 = vsel %vm842_vm0, %v827_v10, 0.0 }
 0x2a9   : > { %v2401_v22 = vsel %vm842_vm0, %v826_v7, 0.0  ;;  %v2406_v39 = vsel %vm842_vm0, %v831_v51, 0.0  ;;  %v2410_v25 = vsel %vm842_vm0, %v830_v54, 0.0  ;;  %v2417_v40 = vsel %vm842_vm0, %v2272_v24, 0.0 }
 0x2ad   : > { %893 = vadd.xlane.f32.xlu2 %v2328_v8  ;;  %891 = vadd.xlane.f32.xlu1 %v2332_v36 }
 0x2ae   : > { %889 = vadd.xlane.f32.xlu0 %v2338_v20 }
 0x2b5   : > { %899 = vadd.xlane.f32.xlu2 %v2346_v37  ;;  %897 = vadd.xlane.f32.xlu1 %v2350_v21 }
 0x2b6   : > { %895 = vadd.xlane.f32.xlu0 %v2356_v15 }
 0x2bd   : > { %905 = vadd.xlane.f32.xlu2 %v2361_v57  ;;  %903 = vadd.xlane.f32.xlu1 %v2365_v63 }
 0x2be   : > { %901 = vadd.xlane.f32.xlu0 %v2371_v3 }
 0x2c5   : > { %911 = vadd.xlane.f32.xlu2 %v2376_v38  ;;  %909 = vadd.xlane.f32.xlu1 %v2380_v26 }
 0x2c6   : > { %907 = vadd.xlane.f32.xlu0 %v2386_v18 }
 0x2cd   : > { %917 = vadd.xlane.f32.xlu2 %v2391_v44  ;;  %915 = vadd.xlane.f32.xlu1 %v2395_v30 }
 0x2ce   : > { %913 = vadd.xlane.f32.xlu0 %v2401_v22 }
 0x2d5   : > { %923 = vadd.xlane.f32.xlu2 %v2406_v39  ;;  %921 = vadd.xlane.f32.xlu1 %v2410_v25 }
 0x2d6   : > { %919 = vadd.xlane.f32.xlu0 %v2417_v40 }
 0x2dd   : > { %929 = vadd.xlane.f32.xlu2 %v2296_v35  ;;  %927 = vadd.xlane.f32.xlu1 %v2300_v50 }
 0x2de   : > { %925 = vadd.xlane.f32.xlu0 %v2304_v27 }
 0x2e5   : > { %935 = vadd.xlane.f32.xlu2 %v2308_v55  ;;  %933 = vadd.xlane.f32.xlu1 %v2312_v46 }
 0x2e6   : > { %931 = vadd.xlane.f32.xlu0 %v2316_v61 }
 0x2ed   : > { %939 = vadd.xlane.f32.xlu1 %v2320_v4 }
 0x2ee   : > { %937 = vadd.xlane.f32.xlu0 %v2324_v12 }
 0x310   : > { %v882_v29 = vpop.xlane.xlu1 %881  ;;  %v886_v10 = vpop.xlane.xlu2 %885 }
 0x311   : > { %v878_v53 = vpop.xlane.xlu0 %877  ;;  %v943_v5 = vadd.f32 1e-09, %v882_v29  ;;  %v945_v52 = vadd.f32 1e-09, %v886_v10 }
 0x312   : > { %v941_v48 = vadd.f32 1e-09, %v878_v53 }
 0x314   : > { %1757 = vrcp.f32 %v941_v48 }
 0x318   : > { %v884_v42 = vpop.xlane.xlu1 %883  ;;  %v888_v54 = vpop.xlane.xlu2 %887 }
 0x319   : > { %v880_v6 = vpop.xlane.xlu0 %879  ;;  %v944_v45 = vadd.f32 1e-09, %v884_v42  ;;  %v946_v19 = vadd.f32 1e-09, %v888_v54 }
 0x31a   : > { %v942_v1 = vadd.f32 1e-09, %v880_v6  ;;  %v1758_v17 = vpop.eup %1757 }
 0x31b   : > { %v1005_v32 = vmul.f32 %v1758_v17, %v2253_v31 }
 0x31c   : > { %1759 = vrcp.f32 %v942_v1 }
 0x31d   : > { %1761 = vrcp.f32 %v944_v45 }
 0x31e   : > { %1763 = vrcp.f32 %v943_v5 }
 0x31f   : > { %1765 = vrcp.f32 %v946_v19 }
 0x320   : > { %1767 = vrcp.f32 %v945_v52  ;;  %v892_v47 = vpop.xlane.xlu1 %891  ;;  %v894_v53 = vpop.xlane.xlu2 %893 }
 0x321   : > { %v890_v59 = vpop.xlane.xlu0 %889  ;;  %v948_v43 = vadd.f32 1e-09, %v892_v47  ;;  %v949_v6 = vadd.f32 1e-09, %v894_v53 }
 0x322   : > { %v1760_v2 = vpop.eup %1759  ;;  %v947_v9 = vadd.f32 1e-09, %v890_v59 }
 0x323   : > { %v1006_v49 = vmul.f32 %v1760_v2, %v2286_v23  ;;  %v1762_v7 = vpop.eup %1761  ;;  %1769 = vrcp.f32 %v948_v43 }
 0x324   : > { %v1764_v51 = vpop.eup %1763  ;;  %v1008_v24 = vmul.f32 %v1762_v7, %v2280_v58  ;;  %1771 = vrcp.f32 %v947_v9 }
 0x325   : > { %v1037_v33 = vpack.c.bf16 %v1006_v49, %v1005_v32  ;;  %v1007_v14 = vmul.f32 %v1764_v51, %v2249_v62  ;;  %v1766_v31 = vpop.eup %1765 }
 0x326   : > { %v1768_v23 = vpop.eup %1767  ;;  %v1010_v0 = vmul.f32 %v1766_v31, %v2276_v13 }
 0x327   : > { %1061 = vmatmul.bf16.vlgmr.msra.gmra.mxu2 %v1037_v33  ;;  %v1038_v28 = vpack.c.bf16 %v1008_v24, %v1007_v14  ;;  %v1009_v34 = vmul.f32 %v1768_v23, %v2245_v41  ;;  %v1672_v24 = vld [vmem:[%s2534_s4 + $0x30] sm:$0xff]  ;;  %v1671_v14 = vld [vmem:[%s2534_s4 + $0x28] sm:$0xff]  ;;  %v1669_v23 = vld [vmem:[%s2534_s4 + $0x18] sm:$0xff] }
 0x328   : > { %v900_v1 = vpop.xlane.xlu2 %899  ;;  %v898_v17 = vpop.xlane.xlu1 %897 }
 0x329   : > { %v1039_v60 = vpack.c.bf16 %v1010_v0, %v1009_v34  ;;  %v1770_v62 = vpop.eup %1769  ;;  %v896_v56 = vpop.xlane.xlu0 %895  ;;  %v952_v2 = vadd.f32 1e-09, %v900_v1  ;;  %v951_v49 = vadd.f32 1e-09, %v898_v17  ;;  %v1668_v34 = vld [vmem:[%s2534_s4 + $0x10] sm:$0xff] }
 0x32a   : > { %v1772_v58 = vpop.eup %1771  ;;  %v1012_v11 = vmul.f32 %v1770_v62, %v2332_v36  ;;  %v950_v48 = vadd.f32 1e-09, %v896_v56  ;;  %v1673_v36 = vld [vmem:[%s2534_s4 + $0x38] sm:$0xff]  ;;  %v1666_v56 = vld [vmem:[%s2534_s4] sm:$0xff] }
 0x32b   : > { %v1011_v16 = vmul.f32 %v1772_v58, %v2338_v20  ;;  %1222 = vmatpush.bf16.msra.mxu3 %v1673_v36 }
 0x32c   : > { %1773 = vrcp.f32 %v950_v48 }
 0x32d   : > { %v1040_v29 = vpack.c.bf16 %v1012_v11, %v1011_v16  ;;  %1775 = vrcp.f32 %v949_v6 }
 0x32e   : > { %1777 = vrcp.f32 %v952_v2 }
 0x32f   : > { %1779 = vrcp.f32 %v951_v49  ;;  %1223 = vmatpush.bf16.msra.mxu3 %v1672_v24 }
 0x330   : > { %v904_v5 = vpop.xlane.xlu1 %903  ;;  %v906_v47 = vpop.xlane.xlu2 %905 }
 0x331   : > { %v902_v10 = vpop.xlane.xlu0 %901  ;;  %v954_v51 = vadd.f32 1e-09, %v904_v5  ;;  %v955_v43 = vadd.f32 1e-09, %v906_v47 }
 0x332   : > { %v1774_v41 = vpop.eup %1773 }
 0x333   : > { %v1776_v13 = vpop.eup %1775  ;;  %v1014_v42 = vmul.f32 %v1774_v41, %v2356_v15  ;;  %1781 = vrcp.f32 %v954_v51  ;;  %1224 = vmatpush.bf16.msra.mxu3 %v1671_v14 }
 0x334   : > { %v1013_v32 = vmul.f32 %v1776_v13, %v2328_v8  ;;  %v1778_v45 = vpop.eup %1777  ;;  %v953_v8 = vadd.f32 1e-09, %v902_v10 }
 0x335   : > { %v1780_v33 = vpop.eup %1779  ;;  %v1016_v15 = vmul.f32 %v1778_v45, %v2346_v37  ;;  %v1670_v37 = vld [vmem:[%s2534_s4 + $0x20] sm:$0xff] }
 0x336   : > { %v1041_v20 = vpack.c.bf16 %v1014_v42, %v1013_v32  ;;  %v1015_v7 = vmul.f32 %v1780_v33, %v2350_v21  ;;  %1783 = vrcp.f32 %v953_v8 }
 0x337   : > { %1066 = vmatmul.bf16.gmra.mxu2 %v1038_v28  ;;  %1225 = vmatpush.bf16.msra.mxu3 %v1670_v37 }
 0x338   : > { %v1042_v54 = vpack.c.bf16 %v1016_v15, %v1015_v7  ;;  %v910_v62 = vpop.xlane.xlu1 %909 }
 0x339   : > { %v1782_v19 = vpop.eup %1781  ;;  %v908_v28 = vpop.xlane.xlu0 %907  ;;  %v957_v53 = vadd.f32 1e-09, %v910_v62 }
 0x33a   : > { %v1018_v31 = vmul.f32 %v1782_v19, %v2365_v63  ;;  %v956_v59 = vadd.f32 1e-09, %v908_v28  ;;  %v1667_v63 = vld [vmem:[%s2534_s4 + $0x8] sm:$0xff] }
 0x33b   : > { %1226 = vmatpush.bf16.msra.mxu3 %v1669_v23 }
 0x33c   : > { %v1784_v21 = vpop.eup %1783  ;;  %1785 = vrcp.f32 %v956_v59 }
 0x33d   : > { %v1017_v52 = vmul.f32 %v1784_v21, %v2371_v3  ;;  %1787 = vrcp.f32 %v955_v43 }
 0x33f   : > { %v1043_v0 = vpack.c.bf16 %v1018_v31, %v1017_v52  ;;  %1227 = vmatpush.bf16.msra.mxu3 %v1668_v34 }
 0x340   : > { %v916_v41 = vpop.xlane.xlu1 %915 }
 0x341   : > { %v914_v13 = vpop.xlane.xlu0 %913  ;;  %v960_v17 = vadd.f32 1e-09, %v916_v41 }
 0x342   : > { %v1786_v3 = vpop.eup %1785  ;;  %v959_v42 = vadd.f32 1e-09, %v914_v13 }
 0x343   : > { %v1788_v9 = vpop.eup %1787  ;;  %1228 = vmatpush.bf16.msra.mxu3 %v1667_v63  ;;  %v1020_v58 = vmul.f32 %v1786_v3, %v2386_v18 }
 0x344   : > { %v1019_v11 = vmul.f32 %v1788_v9, %v2361_v57 }
 0x346   : > { %v1044_v48 = vpack.c.bf16 %v1020_v58, %v1019_v11 }
 0x347   : > { %1071 = vmatmul.bf16.gmra.mxu2 %v1039_v60  ;;  %v912_v60 = vpop.xlane.xlu2 %911  ;;  %1229 = vmatpush.bf16.msra.mxu3 %v1666_v56 }
 0x348   : > { %v958_v16 = vadd.f32 1e-09, %v912_v60  ;;  %v922_v24 = vpop.xlane.xlu1 %921 }
 0x349   : > { %v963_v21 = vadd.f32 1e-09, %v922_v24 }
 0x34a   : > { %1789 = vrcp.f32 %v958_v16 }
 0x34b   : > { %1791 = vrcp.f32 %v957_v53 }
 0x34c   : > { %1793 = vrcp.f32 %v960_v17 }
 0x34d   : > { %1795 = vrcp.f32 %v959_v42 }
 0x34f   : > { %v918_v5 = vpop.xlane.xlu2 %917 }
 0x350   : > { %v961_v7 = vadd.f32 1e-09, %v918_v5  ;;  %v928_v47 = vpop.xlane.xlu1 %927 }
 0x351   : > { %v966_v34 = vadd.f32 1e-09, %v928_v47 }
 0x357   : > { %1076 = vmatmul.bf16.gmra.mxu2 %v1040_v29  ;;  %v1790_v29 = vpop.eup %1789 }
 0x358   : > { %v1792_v6 = vpop.eup %1791  ;;  %v1022_v18 = vmul.f32 %v1790_v29, %v2376_v38 }
 0x359   : > { %v1021_v1 = vmul.f32 %v1792_v6, %v2380_v26  ;;  %v1794_v32 = vpop.eup %1793 }
 0x35a   : > { %v1796_v49 = vpop.eup %1795  ;;  %v1024_v45 = vmul.f32 %v1794_v32, %v2395_v30 }
 0x35b   : > { %v1045_v2 = vpack.c.bf16 %v1022_v18, %v1021_v1  ;;  %v1023_v36 = vmul.f32 %v1796_v49, %v2401_v22  ;;  %v934_v18 = vpop.xlane.xlu1 %933 }
 0x35d   : > { %v1046_v38 = vpack.c.bf16 %v1024_v45, %v1023_v36 }
 0x363   : > { %v940_v45 = vpop.xlane.xlu1 %939 }
 0x367   : > { %1081 = vmatmul.bf16.gmra.mxu2 %v1041_v20  ;;  %v920_v20 = vpop.xlane.xlu0 %919 }
 0x368   : > { %v962_v26 = vadd.f32 1e-09, %v920_v20 }
 0x36a   : > { %1797 = vrcp.f32 %v962_v26  ;;  %v972_v26 = vadd.f32 1e-09, %v940_v45 }
 0x36b   : > { %1799 = vrcp.f32 %v961_v7 }
 0x36f   : > { %v926_v59 = vpop.xlane.xlu0 %925 }
 0x370   : > { %v1798_v51 = vpop.eup %1797  ;;  %v965_v3 = vadd.f32 1e-09, %v926_v59 }
 0x371   : > { %v1800_v8 = vpop.eup %1799  ;;  %v1026_v14 = vmul.f32 %v1798_v51, %v2417_v40 }
 0x372   : > { %v1025_v37 = vmul.f32 %v1800_v8, %v2391_v44 }
 0x374   : > { %v1047_v28 = vpack.c.bf16 %v1026_v14, %v1025_v37 }
 0x377   : > { %1086 = vmatmul.bf16.gmra.mxu2 %v1042_v54  ;;  %v924_v54 = vpop.xlane.xlu2 %923  ;;  %v932_v58 = vpop.xlane.xlu0 %931 }
 0x378   : > { %v964_v19 = vadd.f32 1e-09, %v924_v54  ;;  %v968_v53 = vadd.f32 1e-09, %v932_v58 }
 0x37a   : > { %1801 = vrcp.f32 %v964_v19 }
 0x37b   : > { %1803 = vrcp.f32 %v963_v21 }
 0x37c   : > { %1805 = vrcp.f32 %v966_v34 }
 0x37d   : > { %1807 = vrcp.f32 %v965_v3 }
 0x37e   : > { %1809 = vrcp.f32 %v968_v53 }
 0x37f   : > { %v930_v11 = vpop.xlane.xlu2 %929 }
 0x380   : > { %v1802_v31 = vpop.eup %1801  ;;  %v967_v29 = vadd.f32 1e-09, %v930_v11 }
 0x381   : > { %v1804_v23 = vpop.eup %1803  ;;  %v1028_v40 = vmul.f32 %v1802_v31, %v2406_v39 }
 0x382   : > { %v1806_v60 = vpop.eup %1805  ;;  %1811 = vrcp.f32 %v967_v29 }
 0x383   : > { %v1808_v62 = vpop.eup %1807  ;;  %v1030_v16 = vmul.f32 %v1806_v60, %v2300_v50 }
 0x384   : > { %v1029_v56 = vmul.f32 %v1808_v62, %v2304_v27  ;;  %v1810_v41 = vpop.eup %1809 }
 0x385   : > { %v1032_v17 = vmul.f32 %v1810_v41, %v2316_v61 }
 0x387   : > { %1091 = vmatmul.bf16.gmra.mxu2 %v1043_v0  ;;  %v1027_v0 = vmul.f32 %v1804_v23, %v2410_v25  ;;  %v936_v1 = vpop.xlane.xlu2 %935 }
 0x388   : > { %v1812_v13 = vpop.eup %1811  ;;  %v970_v42 = vadd.f32 1e-09, %v936_v1 }
 0x389   : > { %v1048_v44 = vpack.c.bf16 %v1028_v40, %v1027_v0 }
 0x38a   : > { %1813 = vrcp.f32 %v970_v42 }
 0x390   : > { %v1814_v20 = vpop.eup %1813 }
 0x391   : > { %v1034_v61 = vmul.f32 %v1814_v20, %v2308_v55 }
 0x397   : > { %1096 = vmatmul.bf16.gmra.mxu2 %v1044_v48  ;;  %v1049_v48 = vpack.c.bf16 %v1030_v16, %v1029_v56 }
 0x3a7   : > { %1101 = vmatmul.bf16.gmra.mxu2 %v1045_v2  ;;  %v1031_v2 = vmul.f32 %v1812_v13, %v2296_v35 }
 0x3a9   : > { %v1050_v32 = vpack.c.bf16 %v1032_v17, %v1031_v2 }
 0x3aa   : > { %v1062_v57 = vpop.f32.mrf.mxu2 }
 0x3b2   : > { %v1064_v33 = vpop.f32.mrf.mxu2 }
 0x3b3   : > { %v1142_v10 = vpack.c.bf16 %v1064_v33, %v1062_v57  ;;  %v969_v57 = vadd.f32 1e-09, %v934_v18  ;;  %v938_v33 = vpop.xlane.xlu0 %937 }
 0x3b4   : > { %v971_v7 = vadd.f32 1e-09, %v938_v33 }
 0x3b5   : > { %1230 = vmatmul.bf16.vlgmr.msra.gmra.mxu3 %v1142_v10  ;;  %1815 = vrcp.f32 %v969_v57 }
 0x3b6   : > { %1817 = vrcp.f32 %v972_v26 }
 0x3b7   : > { %1106 = vmatmul.bf16.gmra.mxu2 %v1046_v38  ;;  %1819 = vrcp.f32 %v971_v7 }
 0x3ba   : > { %v1067_v15 = vpop.f32.mrf.mxu2 }
 0x3bb   : > { %v1816_v36 = vpop.eup %1815 }
 0x3bc   : > { %v1033_v5 = vmul.f32 %v1816_v36, %v2312_v46  ;;  %v1818_v51 = vpop.eup %1817 }
 0x3bd   : > { %v1820_v8 = vpop.eup %1819  ;;  %v1036_v24 = vmul.f32 %v1818_v51, %v2320_v4 }
 0x3be   : > { %v1051_v35 = vpack.c.bf16 %v1034_v61, %v1033_v5  ;;  %v1035_v54 = vmul.f32 %v1820_v8, %v2324_v12 }
 0x3c0   : > { %v1052_v55 = vpack.c.bf16 %v1036_v24, %v1035_v54 }
 0x3c2   : > { %v1069_v22 = vpop.f32.mrf.mxu2 }
 0x3c3   : > { %v1143_v30 = vpack.c.bf16 %v1069_v22, %v1067_v15 }
 0x3c5   : > { %1235 = vmatmul.bf16.gmra.mxu3 %v1143_v30 }
 0x3c7   : > { %1111 = vmatmul.bf16.gmra.mxu2 %v1047_v28 }
 0x3ca   : > { %v1072_v52 = vpop.f32.mrf.mxu2 }
 0x3d2   : > { %v1074_v43 = vpop.f32.mrf.mxu2 }
 0x3d3   : > { %v1144_v63 = vpack.c.bf16 %v1074_v43, %v1072_v52 }
 0x3d5   : > { %1240 = vmatmul.bf16.gmra.mxu3 %v1144_v63 }
 0x3d7   : > { %1116 = vmatmul.bf16.gmra.mxu2 %v1048_v44 }
 0x3da   : > { %v1077_v9 = vpop.f32.mrf.mxu2 }
 0x3e2   : > { %v1079_v25 = vpop.f32.mrf.mxu2 }
 0x3e3   : > { %v1145_v39 = vpack.c.bf16 %v1079_v25, %v1077_v9 }
 0x3e5   : > { %1245 = vmatmul.bf16.gmra.mxu3 %v1145_v39 }
 0x3e7   : > { %1121 = vmatmul.bf16.gmra.mxu2 %v1049_v48 }
 0x3ea   : > { %v1082_v6 = vpop.f32.mrf.mxu2 }
 0x3f2   : > { %v1084_v27 = vpop.f32.mrf.mxu2 }
 0x3f3   : > { %v1146_v50 = vpack.c.bf16 %v1084_v27, %v1082_v6 }
 0x3f5   : > { %1250 = vmatmul.bf16.gmra.mxu3 %v1146_v50 }
 0x3f7   : > { %1126 = vmatmul.bf16.gmra.mxu2 %v1050_v32 }
 0x3fa   : > { %v1087_v49 = vpop.f32.mrf.mxu2 }
 0x402   : > { %v1089_v10 = vpop.f32.mrf.mxu2 }
 0x403   : > { %v1147_v38 = vpack.c.bf16 %v1089_v10, %v1087_v49 }
 0x405   : > { %1255 = vmatmul.bf16.gmra.mxu3 %v1147_v38 }
 0x407   : > { %1131 = vmatmul.bf16.gmra.mxu2 %v1051_v35 }
 0x40a   : > { %v1092_v15 = vpop.f32.mrf.mxu2 }
 0x412   : > { %v1094_v46 = vpop.f32.mrf.mxu2 }
 0x413   : > { %v1148_v14 = vpack.c.bf16 %v1094_v46, %v1092_v15 }
 0x415   : > { %1260 = vmatmul.bf16.gmra.mxu3 %v1148_v14 }
 0x417   : > { %1136 = vmatmul.bf16.gmra.mxu2 %v1052_v55 }
 0x41a   : > { %v1097_v22 = vpop.f32.mrf.mxu2 }
 0x422   : > { %v1099_v19 = vpop.f32.mrf.mxu2 }
 0x423   : > { %v1149_v30 = vpack.c.bf16 %v1099_v19, %v1097_v22 }
 0x425   : > { %1265 = vmatmul.bf16.gmra.mxu3 %v1149_v30 }
 0x42a   : > { %v1102_v37 = vpop.f32.mrf.mxu2 }
 0x432   : > { %v1104_v21 = vpop.f32.mrf.mxu2 }
 0x433   : > { %v1150_v28 = vpack.c.bf16 %v1104_v21, %v1102_v37 }
 0x435   : > { %1270 = vmatmul.bf16.gmra.mxu3 %v1150_v28 }
 0x438   : > { %v1231_v4 = vpop.f32.mrf.mxu3 }
 0x439   : > { %1311 = vst [vmem:[%s2489_s13] sm:$0xff] %v1231_v4  ;;  %v1380_v31 = vmul.f32 %v1231_v4, %v1231_v4 }
 0x43a   : > { %v1107_v12 = vpop.f32.mrf.mxu2 }
 0x440   : > { %v1233_v52 = vpop.f32.mrf.mxu3 }
 0x441   : > { %1312 = vst [vmem:[%s2489_s13 + $0x8] sm:$0xff] %v1233_v52  ;;  %v1381_v23 = vmul.f32 %v1233_v52, %v1233_v52  ;;  %v1343_v47 = vadd.f32 %v1233_v52, %v1231_v4 }
 0x442   : > { %v1109_v59 = vpop.f32.mrf.mxu2 }
 0x443   : > { %v1151_v0 = vpack.c.bf16 %v1109_v59, %v1107_v12  ;;  %v1412_v40 = vadd.f32 %v1381_v23, %v1380_v31 }
 0x445   : > { %1275 = vmatmul.bf16.gmra.mxu3 %v1151_v0 }
 0x448   : > { %v1236_v43 = vpop.f32.mrf.mxu3 }
 0x449   : > { %1313 = vst [vmem:[%s2489_s13 + $0x10] sm:$0xff] %v1236_v43  ;;  %v1344_v34 = vadd.f32 %v1343_v47, %v1236_v43  ;;  %v1382_v63 = vmul.f32 %v1236_v43, %v1236_v43 }
 0x44a   : > { %v1112_v3 = vpop.f32.mrf.mxu2 }
 0x44b   : > { %v1413_v44 = vadd.f32 %v1412_v40, %v1382_v63 }
 0x450   : > { %v1238_v9 = vpop.f32.mrf.mxu3 }
 0x451   : > { %1314 = vst [vmem:[%s2489_s13 + $0x18] sm:$0xff] %v1238_v9  ;;  %v1383_v60 = vmul.f32 %v1238_v9, %v1238_v9  ;;  %v1345_v62 = vadd.f32 %v1344_v34, %v1238_v9 }
 0x452   : > { %v1114_v58 = vpop.f32.mrf.mxu2 }
 0x453   : > { %v1152_v56 = vpack.c.bf16 %v1114_v58, %v1112_v3  ;;  %v1414_v16 = vadd.f32 %v1413_v44, %v1383_v60 }
 0x455   : > { %1280 = vmatmul.bf16.gmra.mxu3 %v1152_v56 }
 0x458   : > { %v1241_v25 = vpop.f32.mrf.mxu3 }
 0x459   : > { %1315 = vst [vmem:[%s2489_s13 + $0x20] sm:$0xff] %v1241_v25  ;;  %v1346_v11 = vadd.f32 %v1345_v62, %v1241_v25  ;;  %v1384_v39 = vmul.f32 %v1241_v25, %v1241_v25 }
 0x45a   : > { %v1117_v53 = vpop.f32.mrf.mxu2 }
 0x45b   : > { %v1415_v48 = vadd.f32 %v1414_v16, %v1384_v39 }
 0x460   : > { %v1243_v29 = vpop.f32.mrf.mxu3 }
 0x461   : > { %1316 = vst [vmem:[%s2489_s13 + $0x28] sm:$0xff] %v1243_v29  ;;  %v1385_v6 = vmul.f32 %v1243_v29, %v1243_v29  ;;  %v1347_v41 = vadd.f32 %v1346_v11, %v1243_v29 }
 0x462   : > { %v1119_v13 = vpop.f32.mrf.mxu2 }
 0x463   : > { %v1153_v1 = vpack.c.bf16 %v1119_v13, %v1117_v53  ;;  %v1416_v18 = vadd.f32 %v1415_v48, %v1385_v6 }
 0x465   : > { %1285 = vmatmul.bf16.gmra.mxu3 %v1153_v1 }
 0x468   : > { %v1246_v17 = vpop.f32.mrf.mxu3 }
 0x469   : > { %1317 = vst [vmem:[%s2489_s13 + $0x30] sm:$0xff] %v1246_v17  ;;  %v1348_v27 = vadd.f32 %v1347_v41, %v1246_v17  ;;  %v1386_v42 = vmul.f32 %v1246_v17, %v1246_v17 }
 0x46a   : > { %v1122_v50 = vpop.f32.mrf.mxu2 }
 0x46b   : > { %v1417_v2 = vadd.f32 %v1416_v18, %v1386_v42 }
 0x470   : > { %v1248_v57 = vpop.f32.mrf.mxu3 }
 0x471   : > { %1318 = vst [vmem:[%s2489_s13 + $0x38] sm:$0xff] %v1248_v57  ;;  %v1387_v32 = vmul.f32 %v1248_v57, %v1248_v57  ;;  %v1349_v49 = vadd.f32 %v1348_v27, %v1248_v57 }
 0x472   : > { %v1124_v20 = vpop.f32.mrf.mxu2 }
 0x473   : > { %v1154_v36 = vpack.c.bf16 %v1124_v20, %v1122_v50  ;;  %v1418_v45 = vadd.f32 %v1417_v2, %v1387_v32 }
 0x475   : > { %1290 = vmatmul.bf16.gmra.mxu3 %v1154_v36 }
 0x478   : > { %v1251_v33 = vpop.f32.mrf.mxu3 }
 0x479   : > { %1319 = vst [vmem:[%s2489_s13 + $0x40] sm:$0xff] %v1251_v33  ;;  %v1350_v5 = vadd.f32 %v1349_v49, %v1251_v33  ;;  %v1388_v61 = vmul.f32 %v1251_v33, %v1251_v33 }
 0x47a   : > { %v1127_v10 = vpop.f32.mrf.mxu2 }
 0x47b   : > { %v1419_v26 = vadd.f32 %v1418_v45, %v1388_v61 }
 0x480   : > { %v1253_v38 = vpop.f32.mrf.mxu3 }
 0x481   : > { %1320 = vst [vmem:[%s2489_s13 + $0x48] sm:$0xff] %v1253_v38  ;;  %v1351_v7 = vadd.f32 %v1350_v5, %v1253_v38  ;;  %v1389_v35 = vmul.f32 %v1253_v38, %v1253_v38 }
 0x482   : > { %v1129_v15 = vpop.f32.mrf.mxu2 }
 0x483   : > { %v1420_v51 = vadd.f32 %v1419_v26, %v1389_v35  ;;  %v1155_v8 = vpack.c.bf16 %v1129_v15, %v1127_v10 }
 0x485   : > { %1295 = vmatmul.bf16.gmra.mxu3 %v1155_v8 }
 0x488   : > { %v1256_v54 = vpop.f32.mrf.mxu3 }
 0x489   : > { %1321 = vst [vmem:[%s2489_s13 + $0x50] sm:$0xff] %v1256_v54  ;;  %v1352_v24 = vadd.f32 %v1351_v7, %v1256_v54  ;;  %v1390_v46 = vmul.f32 %v1256_v54, %v1256_v54 }
 0x48a   : > { %v1132_v14 = vpop.f32.mrf.mxu2 }
 0x48b   : > { %v1421_v55 = vadd.f32 %v1420_v51, %v1390_v46 }
 0x490   : > { %v1258_v22 = vpop.f32.mrf.mxu3 }
 0x491   : > { %1322 = vst [vmem:[%s2489_s13 + $0x58] sm:$0xff] %v1258_v22  ;;  %v1353_v19 = vadd.f32 %v1352_v24, %v1258_v22  ;;  %v1391_v30 = vmul.f32 %v1258_v22, %v1258_v22 }
 0x492   : > { %v1134_v37 = vpop.f32.mrf.mxu2 }
 0x493   : > { %v1422_v21 = vadd.f32 %v1421_v55, %v1391_v30  ;;  %v1156_v28 = vpack.c.bf16 %v1134_v37, %v1132_v14 }
 0x495   : > { %1300 = vmatmul.bf16.gmra.mxu3 %v1156_v28 }
 0x498   : > { %v1261_v4 = vpop.f32.mrf.mxu3 }
 0x499   : > { %1323 = vst [vmem:[%s2489_s13 + $0x60] sm:$0xff] %v1261_v4  ;;  %v1354_v12 = vadd.f32 %v1353_v19, %v1261_v4  ;;  %v1392_v52 = vmul.f32 %v1261_v4, %v1261_v4 }
 0x49a   : > { %v1137_v31 = vpop.f32.mrf.mxu2 }
 0x49b   : > { %v1423_v23 = vadd.f32 %v1422_v21, %v1392_v52 }
 0x4a0   : > { %v1263_v47 = vpop.f32.mrf.mxu3 }
 0x4a1   : > { %1324 = vst [vmem:[%s2489_s13 + $0x68] sm:$0xff] %v1263_v47  ;;  %v1355_v59 = vadd.f32 %v1354_v12, %v1263_v47  ;;  %v1393_v0 = vmul.f32 %v1263_v47, %v1263_v47 }
 0x4a2   : > { %v1139_v40 = vpop.f32.mrf.mxu2 }
 0x4a3   : > { %v1424_v43 = vadd.f32 %v1423_v23, %v1393_v0  ;;  %v1157_v34 = vpack.c.bf16 %v1139_v40, %v1137_v31 }
 0x4a5   : > { %1305 = vmatmul.bf16.gmra.mxu3 %v1157_v34 }
 0x4a8   : > { %v1266_v63 = vpop.f32.mrf.mxu3 }
 0x4a9   : > { %1325 = vst [vmem:[%s2489_s13 + $0x70] sm:$0xff] %v1266_v63  ;;  %v1356_v3 = vadd.f32 %v1355_v59, %v1266_v63  ;;  %v1394_v44 = vmul.f32 %v1266_v63, %v1266_v63 }
 0x4ab   : > { %v1425_v9 = vadd.f32 %v1424_v43, %v1394_v44 }
 0x4b0   : > { %v1268_v60 = vpop.f32.mrf.mxu3 }
 0x4b1   : > { %1326 = vst [vmem:[%s2489_s13 + $0x78] sm:$0xff] %v1268_v60  ;;  %v1357_v62 = vadd.f32 %v1356_v3, %v1268_v60  ;;  %v1395_v58 = vmul.f32 %v1268_v60, %v1268_v60 }
 0x4b3   : > { %v1426_v56 = vadd.f32 %v1425_v9, %v1395_v58 }
 0x4b8   : > { %v1271_v16 = vpop.f32.mrf.mxu3 }
 0x4b9   : > { %1327 = vst [vmem:[%s2489_s13 + $0x80] sm:$0xff] %v1271_v16  ;;  %v1358_v25 = vadd.f32 %v1357_v62, %v1271_v16  ;;  %v1396_v11 = vmul.f32 %v1271_v16, %v1271_v16 }
 0x4bb   : > { %v1427_v39 = vadd.f32 %v1426_v56, %v1396_v11 }
 0x4c0   : > { %v1273_v53 = vpop.f32.mrf.mxu3 }
 0x4c1   : > { %1328 = vst [vmem:[%s2489_s13 + $0x88] sm:$0xff] %v1273_v53  ;;  %v1359_v48 = vadd.f32 %v1358_v25, %v1273_v53  ;;  %v1397_v29 = vmul.f32 %v1273_v53, %v1273_v53 }
 0x4c3   : > { %v1428_v6 = vadd.f32 %v1427_v39, %v1397_v29 }
 0x4c8   : > { %v1276_v41 = vpop.f32.mrf.mxu3 }
 0x4c9   : > { %1329 = vst [vmem:[%s2489_s13 + $0x90] sm:$0xff] %v1276_v41  ;;  %v1360_v13 = vadd.f32 %v1359_v48, %v1276_v41  ;;  %v1398_v1 = vmul.f32 %v1276_v41, %v1276_v41 }
 0x4cb   : > { %v1429_v18 = vadd.f32 %v1428_v6, %v1398_v1 }
 0x4d0   : > { %v1278_v17 = vpop.f32.mrf.mxu3 }
 0x4d1   : > { %1330 = vst [vmem:[%s2489_s13 + $0x98] sm:$0xff] %v1278_v17  ;;  %v1361_v27 = vadd.f32 %v1360_v13, %v1278_v17  ;;  %v1399_v42 = vmul.f32 %v1278_v17, %v1278_v17 }
 0x4d3   : > { %v1430_v50 = vadd.f32 %v1429_v18, %v1399_v42 }
 0x4d8   : > { %v1281_v2 = vpop.f32.mrf.mxu3 }
 0x4d9   : > { %1331 = vst [vmem:[%s2489_s13 + $0xa0] sm:$0xff] %v1281_v2  ;;  %v1362_v57 = vadd.f32 %v1361_v27, %v1281_v2  ;;  %v1400_v32 = vmul.f32 %v1281_v2, %v1281_v2 }
 0x4db   : > { %v1431_v49 = vadd.f32 %v1430_v50, %v1400_v32 }
 0x4e0   : > { %v1283_v20 = vpop.f32.mrf.mxu3 }
 0x4e1   : > { %1332 = vst [vmem:[%s2489_s13 + $0xa8] sm:$0xff] %v1283_v20  ;;  %v1401_v38 = vmul.f32 %v1283_v20, %v1283_v20  ;;  %v1363_v7 = vadd.f32 %v1362_v57, %v1283_v20 }
 0x4e3   : > { %v1432_v15 = vadd.f32 %v1431_v49, %v1401_v38 }
 0x4e8   : > { %v1286_v36 = vpop.f32.mrf.mxu3 }
 0x4e9   : > { %1333 = vst [vmem:[%s2489_s13 + $0xb0] sm:$0xff] %v1286_v36  ;;  %v1402_v35 = vmul.f32 %v1286_v36, %v1286_v36  ;;  %v1364_v51 = vadd.f32 %v1363_v7, %v1286_v36 }
 0x4eb   : > { %v1433_v24 = vadd.f32 %v1432_v15, %v1402_v35 }
 0x4f0   : > { %v1288_v45 = vpop.f32.mrf.mxu3 }
 0x4f1   : > { %1334 = vst [vmem:[%s2489_s13 + $0xb8] sm:$0xff] %v1288_v45  ;;  %v1403_v8 = vmul.f32 %v1288_v45, %v1288_v45  ;;  %v1365_v46 = vadd.f32 %v1364_v51, %v1288_v45 }
 0x4f3   : > { %v1434_v55 = vadd.f32 %v1433_v24, %v1403_v8 }
 0x4f8   : > { %v1291_v33 = vpop.f32.mrf.mxu3 }
 0x4f9   : > { %1335 = vst [vmem:[%s2489_s13 + $0xc0] sm:$0xff] %v1291_v33  ;;  %v1404_v14 = vmul.f32 %v1291_v33, %v1291_v33  ;;  %v1366_v22 = vadd.f32 %v1365_v46, %v1291_v33 }
 0x4fb   : > { %v1435_v30 = vadd.f32 %v1434_v55, %v1404_v14 }
 0x500   : > { %v1293_v5 = vpop.f32.mrf.mxu3 }
 0x501   : > { %1336 = vst [vmem:[%s2489_s13 + $0xc8] sm:$0xff] %v1293_v5  ;;  %v1405_v19 = vmul.f32 %v1293_v5, %v1293_v5  ;;  %v1367_v37 = vadd.f32 %v1366_v22, %v1293_v5 }
 0x503   : > { %v1436_v28 = vadd.f32 %v1435_v30, %v1405_v19 }
 0x508   : > { %v1296_v61 = vpop.f32.mrf.mxu3 }
 0x509   : > { %1337 = vst [vmem:[%s2489_s13 + $0xd0] sm:$0xff] %v1296_v61  ;;  %v1406_v21 = vmul.f32 %v1296_v61, %v1296_v61  ;;  %v1368_v4 = vadd.f32 %v1367_v37, %v1296_v61 }
 0x50b   : > { %v1437_v31 = vadd.f32 %v1436_v28, %v1406_v21 }
 0x510   : > { %v1298_v10 = vpop.f32.mrf.mxu3 }
 0x511   : > { %1338 = vst [vmem:[%s2489_s13 + $0xd8] sm:$0xff] %v1298_v10  ;;  %v1407_v12 = vmul.f32 %v1298_v10, %v1298_v10  ;;  %v1369_v23 = vadd.f32 %v1368_v4, %v1298_v10 }
 0x513   : > { %v1438_v59 = vadd.f32 %v1437_v31, %v1407_v12 }
 0x518   : > { %v1301_v26 = vpop.f32.mrf.mxu3 }
 0x519   : > { %1339 = vst [vmem:[%s2489_s13 + $0xe0] sm:$0xff] %v1301_v26  ;;  %v1408_v47 = vmul.f32 %v1301_v26, %v1301_v26  ;;  %v1370_v0 = vadd.f32 %v1369_v23, %v1301_v26 }
 0x51b   : > { %v1439_v43 = vadd.f32 %v1438_v59, %v1408_v47 }
 0x520   : > { %v1303_v54 = vpop.f32.mrf.mxu3 }
 0x521   : > { %1340 = vst [vmem:[%s2489_s13 + $0xe8] sm:$0xff] %v1303_v54  ;;  %v1409_v40 = vmul.f32 %v1303_v54, %v1303_v54  ;;  %v1371_v34 = vadd.f32 %v1370_v0, %v1303_v54 }
 0x523   : > { %v1440_v3 = vadd.f32 %v1439_v43, %v1409_v40 }
 0x528   : > { %v1306_v52 = vpop.f32.mrf.mxu3 }
 0x529   : > { %1341 = vst [vmem:[%s2489_s13 + $0xf0] sm:$0xff] %v1306_v52  ;;  %v1410_v63 = vmul.f32 %v1306_v52, %v1306_v52  ;;  %v1372_v44 = vadd.f32 %v1371_v34, %v1306_v52 }
 0x52b   : > { %v1441_v60 = vadd.f32 %v1440_v3, %v1410_v63 }
 0x530   : > { %v1308_v9 = vpop.f32.mrf.mxu3 }
 0x531   : > { %1342 = vst [vmem:[%s2489_s13 + $0xf8] sm:$0xff] %v1308_v9  ;;  %v1373_v62 = vadd.f32 %v1372_v44, %v1308_v9  ;;  %v1411_v58 = vmul.f32 %v1308_v9, %v1308_v9 }
 0x533   : > { %v1374_v56 = vrot.slane %v1373_v62, 4  ;;  %v1442_v16 = vadd.f32 %v1441_v60, %v1411_v58 }
 0x535   : > { %v1375_v25 = vadd.f32 %v1374_v56, %v1373_v62  ;;  %v1443_v11 = vrot.slane %v1442_v16, 4 }
 0x537   : > { %v1376_v39 = vrot.slane %v1375_v25, 2  ;;  %v1444_v53 = vadd.f32 %v1443_v11, %v1442_v16 }
 0x539   : > { %v1377_v48 = vadd.f32 %v1376_v39, %v1375_v25  ;;  %v1445_v29 = vrot.slane %v1444_v53, 2 }
 0x53b   : > { %v1378_v6 = vrot.slane %v1377_v48, 1  ;;  %v1446_v41 = vadd.f32 %v1445_v29, %v1444_v53 }
 0x53d   : > { %v1447_v13 = vrot.slane %v1446_v41, 1  ;;  %v1379_v1 = vadd.f32 %v1378_v6, %v1377_v48 }
 0x53f   : > { %v1448_v18 = vadd.f32 %v1447_v13, %v1446_v41 }
 0x541   : > { %v1450_v17 = vsel %vm1449_vm1, %v1379_v1, %v1448_v18 }
 0x542   : > { %v1452_v27 = vsel %vm1451_vm2, %v1450_v17, 0.0 }
 0x543   : > { %1453 = vst [vmem:[%s262_s16] sm:$0xff] %v1452_v27 }
 0x544 PF: > { %s17_s21 = sadd.s32 1, %s1827_s21  }
 0x545   : > { %p14_p4 = scmp.ge.s32.totalorder %s17_s21, 4  }
 0x547   :  { %16 = sbr.rel (!%p14_p4) target bundleno = 1 (0x1), region = 82 }

</bundles_post_ra>
